<compile_context>
chip_gen: v5e
topology: v5e:2x2
jax: 0.10.0
libtpu: 0.0.40
codegen_flags: <defaults>
</compile_context>

<pallas_src>
import jax
import jax.numpy as jnp
from jax.experimental import pallas as pl
from jax.experimental.pallas import tpu as pltpu

EPS = 1e-5
LANE = 128
W_OFF = 8          # sublane-aligned W offset of the interior inside the conv2 scratch


def _round_up(x, m):
    return (x + m - 1) // m * m


# ---------------------------------------------------------------------------
# Fused kernel: conv1 (+skip) -> BN1 -> ReLU -> conv2 -> BN2 -> add -> ReLU
# ---------------------------------------------------------------------------
def _make_fused_kernel(mode, n, ho, wo, cp, cout):
    m = n * ho * wo
    inv_m = 1.0 / m

    def finish(y1, skip, g1, b1, g2, b2, w2, out_ref, a1p_ref):
        # --- BatchNorm1 (exact train-mode batch stats, centered variance) + ReLU
        mu1 = jnp.sum(y1, axis=0, keepdims=True) * inv_m
        d1 = y1 - mu1
        var1 = jnp.sum(d1 * d1, axis=0, keepdims=True) * inv_m
        a1 = jnp.maximum(d1 * (g1 * jax.lax.rsqrt(var1 + EPS)) + b1, 0.0)

        # --- spatially zero-padded activation in a VMEM scratch (no XLA pad / mask).
        # Interior stored at W offset 8 so the store is sublane-aligned; the 3x3 taps
        # read at W offsets 7/8/9 (unaligned reads are cheap).
        a1p_ref[...] = jnp.zeros_like(a1p_ref)
        a1p_ref[:, 1:ho + 1, W_OFF:W_OFF + wo, :] = a1.reshape(n, ho, wo, cp)
        a1p = a1p_ref[...].astype(jnp.bfloat16)

        # --- conv2 (3x3, s=1, p=1): in-VMEM im2col -> single K = 9*cp MXU matmul
        wins = [a1p[:, di:di + ho, W_OFF - 1 + dj:W_OFF - 1 + dj + wo, :].reshape(m, cp)
                for di in range(3) for dj in range(3)]
        col = jnp.concatenate(wins, axis=-1)                       # (m, 9*cp) bf16
        y2 = jnp.dot(col, w2, preferred_element_type=jnp.float32)

        # --- BatchNorm2 + residual add + final ReLU
        mu2 = jnp.sum(y2, axis=0, keepdims=True) * inv_m
        d2 = y2 - mu2
        var2 = jnp.sum(d2 * d2, axis=0, keepdims=True) * inv_m
        out = jnp.maximum(d2 * (g2 * jax.lax.rsqrt(var2 + EPS)) + b2 + skip, 0.0)

        # only the valid out_channels lanes go back to HBM (masked store)
        out_ref[...] = out.reshape(n, ho, wo, cp)[:, :, :, :cout]

    if mode == "center":
        # skip's 1x1 weights ride in the centre-tap rows of a (k1p, 2*cp) weight:
        # one N=2*cp matmul produces [y1 | skip] together.
        def kernel(p_ref, wcat_ref, bsk_ref, g1_ref, b1_ref, g2_ref, b2_ref,
                   w2_ref, out_ref, a1p_ref):
            k1p = p_ref.shape[-1]
            p = p_ref[...].reshape(m, k1p)
            ycat = jnp.dot(p, wcat_ref[...], preferred_element_type=jnp.float32)
            y1 = ycat[:, :cp]
            skip = ycat[:, cp:] + bsk_ref[...]
            finish(y1, skip, g1_ref[...], b1_ref[...], g2_ref[...], b2_ref[...],
                   w2_ref[...], out_ref, a1p_ref)
        return kernel

    if mode == "sep":
        def kernel(p_ref, w1_ref, xs_ref, wsk_ref, bsk_ref, g1_ref, b1_ref,
                   g2_ref, b2_ref, w2_ref, out_ref, a1p_ref):
            k1p = p_ref.shape[-1]
            cinp = xs_ref.shape[-1]
            p = p_ref[...].reshape(m, k1p)
            y1 = jnp.dot(p, w1_ref[...], preferred_element_type=jnp.float32)
            xs = xs_ref[...].reshape(m, cinp)
            skip = (jnp.dot(xs, wsk_ref[...], preferred_element_type=jnp.float32)
                    + bsk_ref[...])
            finish(y1, skip, g1_ref[...], b1_ref[...], g2_ref[...], b2_ref[...],
                   w2_ref[...], out_ref, a1p_ref)
        return kernel

    def kernel(p_ref, w1_ref, xid_ref, g1_ref, b1_ref, g2_ref, b2_ref,
               w2_ref, out_ref, a1p_ref):                # identity skip
        k1p = p_ref.shape[-1]
        p = p_ref[...].reshape(m, k1p)
        y1 = jnp.dot(p, w1_ref[...], preferred_element_type=jnp.float32)
        skip = xid_ref[...].reshape(m, cp)
        finish(y1, skip, g1_ref[...], b1_ref[...], g2_ref[...], b2_ref[...],
               w2_ref[...], out_ref, a1p_ref)
    return kernel


# ---------------------------------------------------------------------------
# JAX glue: im2col, parameter packing, forward wrapper, pure-JAX reference
# ---------------------------------------------------------------------------
def im2col_nhwc(x, k, stride, pad):
    """(N,H,W,C) -> patches (N,Ho,Wo,k*k*C), tap-major / channel-minor layout."""
    n, h, w, c = x.shape
    xp = jnp.pad(x, ((0, 0), (pad, pad), (pad, pad), (0, 0)))
    ho = (h + 2 * pad - k) // stride + 1
    wo = (w + 2 * pad - k) // stride + 1
    cols = []
    for di in range(k):
        for dj in range(k):
            cols.append(xp[:, di:di + stride * (ho - 1) + 1:stride,
                           dj:dj + stride * (wo - 1) + 1:stride, :])
    p = jnp.stack(cols, axis=3)                                    # (N,Ho,Wo,k*k,C)
    return p.reshape(n, ho, wo, k * k * c), ho, wo


def init_params(key, cin, cout, k, stride, padding):
    ks = jax.random.split(key, 4)
    w1 = 0.1 * jax.random.normal(ks[0], (k, k, cin, cout), jnp.float32)      # HWIO
    w2 = 0.1 * jax.random.normal(ks[1], (3, 3, cout, cout), jnp.float32)     # HWIO
    need_skip = (cin != cout) or (stride != 1)
    raw = {"w1": w1, "w2": w2}

    cp = _round_up(cout, LANE)
    k1 = k * k * cin
    k1p = _round_up(k1, LANE)

    gamma = jnp.zeros((1, cp), jnp.float32).at[0, :cout].set(1.0)   # padded lanes stay 0
    beta = jnp.zeros((1, cp), jnp.float32)

    # conv2 weight as a single (9*cp, cp) im2col slab (tap-major row blocks)
    w2g = jnp.zeros((9 * cp, cp), jnp.float32)
    w2t = w2.reshape(9, cout, cout)
    for t in range(9):
        w2g = w2g.at[t * cp:t * cp + cout, :cout].set(w2t[t])

    packed = {"g1": gamma, "b1": beta, "g2": gamma, "b2": beta,
              "w2": w2g.astype(jnp.bfloat16)}

    if need_skip:
        raw["wsk"] = 0.1 * jax.random.normal(ks[2], (cin, cout), jnp.float32)
        raw["bsk"] = 0.01 * jax.random.normal(ks[3], (cout,), jnp.float32)
        packed["bsk"] = jnp.zeros((1, cp), jnp.float32).at[0, :cout].set(raw["bsk"])

    if need_skip and (k % 2 == 1) and (padding == k // 2):
        mode = "center"                                   # skip folded into conv1 matmul
        wcat = jnp.zeros((k1p, 2 * cp), jnp.float32)
        wcat = wcat.at[:k1, :cout].set(w1.reshape(k1, cout))
        ct = (k // 2) * k + (k // 2)                      # centre-tap row block
        wcat = wcat.at[ct * cin:ct * cin + cin, cp:cp + cout].set(raw["wsk"])
        packed["wcat"] = wcat.astype(jnp.bfloat16)
    else:
        w1p = jnp.zeros((k1p, cp), jnp.float32).at[:k1, :cout].set(w1.reshape(k1, cout))
        packed["w1"] = w1p.astype(jnp.bfloat16)
        if need_skip:
            mode = "sep"
            cinp = _round_up(cin, LANE)
            packed["wsk"] = (jnp.zeros((cinp, cp), jnp.float32)
                             .at[:cin, :cout].set(raw["wsk"]).astype(jnp.bfloat16))
        else:
            mode = "ident"
    return raw, packed, mode


def residual_conv_block(x_nchw, packed, mode, out_channels, kernel_size, stride, padding):
    x = jnp.transpose(x_nchw, (0, 2, 3, 1)).astype(jnp.float32)      # NCHW -> NHWC
    n, h, w, cin = x.shape
    cp = packed["g1"].shape[-1]

    # conv1 im2col (XLA glue), channel-padded to a lane multiple, bf16 MXU operands.
    patches, ho, wo = im2col_nhwc(x, kernel_size, stride, padding)
    k1 = patches.shape[-1]
    k1p = _round_up(k1, LANE)
    patches = jnp.pad(patches, ((0, 0), (0, 0), (0, 0), (0, k1p - k1))).astype(jnp.bfloat16)

    m = n * ho * wo
    pad_w = wo + 2 * W_OFF
    vmem_bytes = (4 * n * (ho + 2) * pad_w * cp          # conv2 scratch (f32)
                  + 2 * m * 9 * cp                       # in-VMEM im2col column (bf16)
                  + 6 * 4 * m * cp                       # f32 temporaries
                  + 2 * m * k1p                          # conv1 patches (bf16)
                  + 2 * (k1p * 2 * cp + 9 * cp * cp))    # weights (bf16)
    assert vmem_bytes < 20 * 1024 * 1024, (
        "input too large for the fused single-pass kernel")  # TODO(synk): tiled fallback

    if mode == "center":
        args = (patches, packed["wcat"], packed["bsk"],
                packed["g1"], packed["b1"], packed["g2"], packed["b2"], packed["w2"])
    elif mode == "sep":
        cinp = packed["wsk"].shape[0]
        xs = x[:, ::stride, ::stride, :][:, :ho, :wo, :]
        xs = jnp.pad(xs, ((0, 0), (0, 0), (0, 0), (0, cinp - cin))).astype(jnp.bfloat16)
        args = (patches, packed["w1"], xs, packed["wsk"], packed["bsk"],
                packed["g1"], packed["b1"], packed["g2"], packed["b2"], packed["w2"])
    else:   # identity skip
        assert (ho, wo) == (h, w), "identity skip needs conv1 to preserve spatial dims"
        xid = jnp.pad(x, ((0, 0), (0, 0), (0, 0), (0, cp - cin)))
        args = (patches, packed["w1"], xid,
                packed["g1"], packed["b1"], packed["g2"], packed["b2"], packed["w2"])

    out = pl.pallas_call(
        _make_fused_kernel(mode, n, ho, wo, cp, out_channels),
        out_shape=jax.ShapeDtypeStruct((n, ho, wo, out_channels), jnp.float32),
        scratch_shapes=[pltpu.VMEM((n, ho + 2, pad_w, cp), jnp.float32)],
    )(*args)

    return jnp.transpose(out, (0, 3, 1, 2))                          # NHWC -> NCHW


def ref_residual_block(x_nchw, raw, stride, padding):
    """Pure-JAX f32 reference of the PyTorch module (train-mode BatchNorm)."""
    dn = ("NHWC", "HWIO", "NHWC")
    x = jnp.transpose(x_nchw, (0, 2, 3, 1)).astype(jnp.float32)

    def bn(y):
        mu = jnp.mean(y, axis=(0, 1, 2), keepdims=True)
        var = jnp.mean(jnp.square(y - mu), axis=(0, 1, 2), keepdims=True)
        return (y - mu) * jax.lax.rsqrt(var + EPS)

    y1 = jax.lax.conv_general_dilated(x, raw["w1"], (stride, stride),
                                      [(padding, padding)] * 2, dimension_numbers=dn)
    a1 = jnp.maximum(bn(y1), 0.0)
    y2 = bn(jax.lax.conv_general_dilated(a1, raw["w2"], (1, 1),
                                         [(1, 1), (1, 1)], dimension_numbers=dn))
    if "wsk" in raw:
        cin, cout = raw["wsk"].shape
        skip = jax.lax.conv_general_dilated(
            x, raw["wsk"].reshape(1, 1, cin, cout), (stride, stride), [(0, 0), (0, 0)],
            dimension_numbers=dn) + raw["bsk"]
    else:
        skip = x
    return jnp.transpose(jnp.maximum(y2 + skip, 0.0), (0, 3, 1, 2))


if __name__ == "__main__":
    # ResidualConvBlock(in_channels=4, out_channels=8, kernel_size=3, stride=2, padding=1)
    in_channels, out_channels, kernel_size, stride, padding = 4, 8, 3, 2, 1

    key = jax.random.PRNGKey(0)
    kx, kp = jax.random.split(key)
    x = jax.random.normal(kx, (2, in_channels, 16, 16), jnp.float32)   # NCHW like PyTorch

    raw, packed, mode = init_params(kp, in_channels, out_channels, kernel_size, stride,
                                    padding)

    fwd = jax.jit(lambda xx: residual_conv_block(
        xx, packed, mode, out_channels, kernel_size, stride, padding))
    out = fwd(x)
    jax.block_until_ready(out)

    ref = ref_residual_block(x, raw, stride, padding)
    max_err = float(jnp.max(jnp.abs(out - ref)))

    assert out.shape == (2, out_channels, 8, 8), out.shape
    assert bool(jnp.all(jnp.isfinite(out)))
    assert bool(jnp.all(out >= 0.0))                       # final ReLU
    assert max_err < 1e-1, f"max |pallas - reference| = {max_err}"
    print("KERNEL_OK")
</pallas_src>

<mosaic_0001>
module attributes {stable_mosaic.version = 11 : i64} {
  func.func @kernel(%arg0: memref<2x8x8x128xbf16, #tpu.memory_space<vmem>>, %arg1: memref<128x256xbf16, #tpu.memory_space<vmem>>, %arg2: memref<1x128xf32, #tpu.memory_space<vmem>>, %arg3: memref<1x128xf32, #tpu.memory_space<vmem>>, %arg4: memref<1x128xf32, #tpu.memory_space<vmem>>, %arg5: memref<1x128xf32, #tpu.memory_space<vmem>>, %arg6: memref<1x128xf32, #tpu.memory_space<vmem>>, %arg7: memref<1152x128xbf16, #tpu.memory_space<vmem>>, %arg8: memref<2x8x8x8xf32, #tpu.memory_space<vmem>>, %arg9: memref<2x10x24x128xf32, #tpu.memory_space<vmem>>) attributes {dimension_semantics = [], scalar_prefetch = 0 : i64, scratch_operands = 1 : i64, tpu.core_type = #tpu.core_type<tc>} {
    %c0 = arith.constant 0 : index
    %c0_0 = arith.constant 0 : index
    %c0_1 = arith.constant 0 : index
    %c0_2 = arith.constant 0 : index
    %0 = vector.load %arg0[%c0, %c0_0, %c0_1, %c0_2] : memref<2x8x8x128xbf16, #tpu.memory_space<vmem>>, vector<2x8x8x128xbf16>
    %1 = vector.shape_cast %0 : vector<2x8x8x128xbf16> to vector<128x128xbf16>
    %c0_3 = arith.constant 0 : index
    %c0_4 = arith.constant 0 : index
    %2 = vector.load %arg1[%c0_3, %c0_4] : memref<128x256xbf16, #tpu.memory_space<vmem>>, vector<128x256xbf16>
    %cst = arith.constant dense<0.000000e+00> : vector<128x256xf32>
    %3 = tpu.matmul %1, %2, %cst {dimension_numbers = #tpu.dot_dimension_numbers<[1], [0], [0], [1], [0, 0, 1, 1], [], []>} : vector<128x128xbf16>, vector<128x256xbf16>, vector<128x256xf32> -> vector<128x256xf32>
    %4 = vector.extract_strided_slice %3 {offsets = [0, 0], sizes = [128, 128], strides = [1, 1]} : vector<128x256xf32> to vector<128x128xf32>
    %5 = vector.extract_strided_slice %3 {offsets = [0, 128], sizes = [128, 128], strides = [1, 1]} : vector<128x256xf32> to vector<128x128xf32>
    %c0_5 = arith.constant 0 : index
    %c0_6 = arith.constant 0 : index
    %6 = vector.load %arg2[%c0_5, %c0_6] : memref<1x128xf32, #tpu.memory_space<vmem>>, vector<1x128xf32>
    %7 = vector.broadcast %6 : vector<1x128xf32> to vector<128x128xf32>
    %8 = arith.addf %5, %7 : vector<128x128xf32>
    %c0_7 = arith.constant 0 : index
    %c0_8 = arith.constant 0 : index
    %9 = vector.load %arg3[%c0_7, %c0_8] : memref<1x128xf32, #tpu.memory_space<vmem>>, vector<1x128xf32>
    %c0_9 = arith.constant 0 : index
    %c0_10 = arith.constant 0 : index
    %10 = vector.load %arg4[%c0_9, %c0_10] : memref<1x128xf32, #tpu.memory_space<vmem>>, vector<1x128xf32>
    %c0_11 = arith.constant 0 : index
    %c0_12 = arith.constant 0 : index
    %11 = vector.load %arg5[%c0_11, %c0_12] : memref<1x128xf32, #tpu.memory_space<vmem>>, vector<1x128xf32>
    %c0_13 = arith.constant 0 : index
    %c0_14 = arith.constant 0 : index
    %12 = vector.load %arg6[%c0_13, %c0_14] : memref<1x128xf32, #tpu.memory_space<vmem>>, vector<1x128xf32>
    %c0_15 = arith.constant 0 : index
    %c0_16 = arith.constant 0 : index
    %13 = vector.load %arg7[%c0_15, %c0_16] : memref<1152x128xbf16, #tpu.memory_space<vmem>>, vector<1152x128xbf16>
    %cst_17 = arith.constant dense<0.000000e+00> : vector<128xf32>
    %14 = vector.multi_reduction <add>, %4, %cst_17 [0] : vector<128x128xf32> to vector<128xf32>
    %15 = vector.shape_cast %14 : vector<128xf32> to vector<1x128xf32>
    %cst_18 = arith.constant 7.812500e-03 : f32
    %16 = vector.broadcast %cst_18 : f32 to vector<1x128xf32>
    %17 = arith.mulf %15, %16 : vector<1x128xf32>
    %18 = vector.broadcast %17 : vector<1x128xf32> to vector<128x128xf32>
    %19 = arith.subf %4, %18 : vector<128x128xf32>
    %20 = arith.mulf %19, %19 : vector<128x128xf32>
    %cst_19 = arith.constant dense<0.000000e+00> : vector<128xf32>
    %21 = vector.multi_reduction <add>, %20, %cst_19 [0] : vector<128x128xf32> to vector<128xf32>
    %22 = vector.shape_cast %21 : vector<128xf32> to vector<1x128xf32>
    %cst_20 = arith.constant 7.812500e-03 : f32
    %23 = vector.broadcast %cst_20 : f32 to vector<1x128xf32>
    %24 = arith.mulf %22, %23 : vector<1x128xf32>
    %cst_21 = arith.constant 9.99999974E-6 : f32
    %25 = vector.broadcast %cst_21 : f32 to vector<1x128xf32>
    %26 = arith.addf %24, %25 : vector<1x128xf32>
    %27 = math.rsqrt %26 : vector<1x128xf32>
    %28 = arith.mulf %9, %27 : vector<1x128xf32>
    %29 = vector.broadcast %28 : vector<1x128xf32> to vector<128x128xf32>
    %30 = arith.mulf %19, %29 : vector<128x128xf32>
    %31 = vector.broadcast %10 : vector<1x128xf32> to vector<128x128xf32>
    %32 = arith.addf %30, %31 : vector<128x128xf32>
    %cst_22 = arith.constant 0.000000e+00 : f32
    %33 = vector.broadcast %cst_22 : f32 to vector<128x128xf32>
    %34 = arith.maximumf %32, %33 : vector<128x128xf32>
    %cst_23 = arith.constant 0.000000e+00 : f32
    %35 = vector.broadcast %cst_23 : f32 to vector<2x10x24x128xf32>
    %c0_24 = arith.constant 0 : index
    %c0_25 = arith.constant 0 : index
    %c0_26 = arith.constant 0 : index
    %c0_27 = arith.constant 0 : index
    %36 = vector.load %arg9[%c0_24, %c0_25, %c0_26, %c0_27] : memref<2x10x24x128xf32, #tpu.memory_space<vmem>>, vector<2x10x24x128xf32>
    tpu.vector_store %arg9[%c0_24, %c0_25, %c0_26, %c0_27], %35 {strides = array<i32>} : memref<2x10x24x128xf32, #tpu.memory_space<vmem>>, vector<2x10x24x128xf32>,
    %37 = vector.shape_cast %34 : vector<128x128xf32> to vector<2x8x8x128xf32>
    %c0_28 = arith.constant 0 : index
    %c1 = arith.constant 1 : index
    %c8 = arith.constant 8 : index
    %c0_29 = arith.constant 0 : index
    %38 = vector.load %arg9[%c0_28, %c1, %c8, %c0_29] : memref<2x10x24x128xf32, #tpu.memory_space<vmem>>, vector<2x8x8x128xf32>
    tpu.vector_store %arg9[%c0_28, %c1, %c8, %c0_29], %37 {strides = array<i32>} : memref<2x10x24x128xf32, #tpu.memory_space<vmem>>, vector<2x8x8x128xf32>,
    %c0_30 = arith.constant 0 : index
    %c0_31 = arith.constant 0 : index
    %c0_32 = arith.constant 0 : index
    %c0_33 = arith.constant 0 : index
    %39 = vector.load %arg9[%c0_30, %c0_31, %c0_32, %c0_33] : memref<2x10x24x128xf32, #tpu.memory_space<vmem>>, vector<2x10x24x128xf32>
    %40 = arith.truncf %39 : vector<2x10x24x128xf32> to vector<2x10x24x128xbf16>
    %41 = vector.extract_strided_slice %40 {offsets = [0, 0, 7, 0], sizes = [2, 8, 8, 128], strides = [1, 1, 1, 1]} : vector<2x10x24x128xbf16> to vector<2x8x8x128xbf16>
    %42 = vector.shape_cast %41 : vector<2x8x8x128xbf16> to vector<128x128xbf16>
    %43 = vector.extract_strided_slice %40 {offsets = [0, 0, 8, 0], sizes = [2, 8, 8, 128], strides = [1, 1, 1, 1]} : vector<2x10x24x128xbf16> to vector<2x8x8x128xbf16>
    %44 = vector.shape_cast %43 : vector<2x8x8x128xbf16> to vector<128x128xbf16>
    %45 = vector.extract_strided_slice %40 {offsets = [0, 0, 9, 0], sizes = [2, 8, 8, 128], strides = [1, 1, 1, 1]} : vector<2x10x24x128xbf16> to vector<2x8x8x128xbf16>
    %46 = vector.shape_cast %45 : vector<2x8x8x128xbf16> to vector<128x128xbf16>
    %47 = vector.extract_strided_slice %40 {offsets = [0, 1, 7, 0], sizes = [2, 8, 8, 128], strides = [1, 1, 1, 1]} : vector<2x10x24x128xbf16> to vector<2x8x8x128xbf16>
    %48 = vector.shape_cast %47 : vector<2x8x8x128xbf16> to vector<128x128xbf16>
    %49 = vector.extract_strided_slice %40 {offsets = [0, 1, 8, 0], sizes = [2, 8, 8, 128], strides = [1, 1, 1, 1]} : vector<2x10x24x128xbf16> to vector<2x8x8x128xbf16>
    %50 = vector.shape_cast %49 : vector<2x8x8x128xbf16> to vector<128x128xbf16>
    %51 = vector.extract_strided_slice %40 {offsets = [0, 1, 9, 0], sizes = [2, 8, 8, 128], strides = [1, 1, 1, 1]} : vector<2x10x24x128xbf16> to vector<2x8x8x128xbf16>
    %52 = vector.shape_cast %51 : vector<2x8x8x128xbf16> to vector<128x128xbf16>
    %53 = vector.extract_strided_slice %40 {offsets = [0, 2, 7, 0], sizes = [2, 8, 8, 128], strides = [1, 1, 1, 1]} : vector<2x10x24x128xbf16> to vector<2x8x8x128xbf16>
    %54 = vector.shape_cast %53 : vector<2x8x8x128xbf16> to vector<128x128xbf16>
    %55 = vector.extract_strided_slice %40 {offsets = [0, 2, 8, 0], sizes = [2, 8, 8, 128], strides = [1, 1, 1, 1]} : vector<2x10x24x128xbf16> to vector<2x8x8x128xbf16>
    %56 = vector.shape_cast %55 : vector<2x8x8x128xbf16> to vector<128x128xbf16>
    %57 = vector.extract_strided_slice %40 {offsets = [0, 2, 9, 0], sizes = [2, 8, 8, 128], strides = [1, 1, 1, 1]} : vector<2x10x24x128xbf16> to vector<2x8x8x128xbf16>
    %58 = vector.shape_cast %57 : vector<2x8x8x128xbf16> to vector<128x128xbf16>
    %59 = tpu.concatenate %42, %44, %46, %48, %50, %52, %54, %56, %58 in 1 : vector<128x128xbf16>, vector<128x128xbf16>, vector<128x128xbf16>, vector<128x128xbf16>, vector<128x128xbf16>, vector<128x128xbf16>, vector<128x128xbf16>, vector<128x128xbf16>, vector<128x128xbf16> -> vector<128x1152xbf16>
    %cst_34 = arith.constant dense<0.000000e+00> : vector<128x128xf32>
    %60 = tpu.matmul %59, %13, %cst_34 {dimension_numbers = #tpu.dot_dimension_numbers<[1], [0], [0], [1], [0, 0, 1, 1], [], []>} : vector<128x1152xbf16>, vector<1152x128xbf16>, vector<128x128xf32> -> vector<128x128xf32>
    %cst_35 = arith.constant dense<0.000000e+00> : vector<128xf32>
    %61 = vector.multi_reduction <add>, %60, %cst_35 [0] : vector<128x128xf32> to vector<128xf32>
    %62 = vector.shape_cast %61 : vector<128xf32> to vector<1x128xf32>
    %cst_36 = arith.constant 7.812500e-03 : f32
    %63 = vector.broadcast %cst_36 : f32 to vector<1x128xf32>
    %64 = arith.mulf %62, %63 : vector<1x128xf32>
    %65 = vector.broadcast %64 : vector<1x128xf32> to vector<128x128xf32>
    %66 = arith.subf %60, %65 : vector<128x128xf32>
    %67 = arith.mulf %66, %66 : vector<128x128xf32>
    %cst_37 = arith.constant dense<0.000000e+00> : vector<128xf32>
    %68 = vector.multi_reduction <add>, %67, %cst_37 [0] : vector<128x128xf32> to vector<128xf32>
    %69 = vector.shape_cast %68 : vector<128xf32> to vector<1x128xf32>
    %cst_38 = arith.constant 7.812500e-03 : f32
    %70 = vector.broadcast %cst_38 : f32 to vector<1x128xf32>
    %71 = arith.mulf %69, %70 : vector<1x128xf32>
    %cst_39 = arith.constant 9.99999974E-6 : f32
    %72 = vector.broadcast %cst_39 : f32 to vector<1x128xf32>
    %73 = arith.addf %71, %72 : vector<1x128xf32>
    %74 = math.rsqrt %73 : vector<1x128xf32>
    %75 = arith.mulf %11, %74 : vector<1x128xf32>
    %76 = vector.broadcast %75 : vector<1x128xf32> to vector<128x128xf32>
    %77 = arith.mulf %66, %76 : vector<128x128xf32>
    %78 = vector.broadcast %12 : vector<1x128xf32> to vector<128x128xf32>
    %79 = arith.addf %77, %78 : vector<128x128xf32>
    %80 = arith.addf %79, %8 : vector<128x128xf32>
    %cst_40 = arith.constant 0.000000e+00 : f32
    %81 = vector.broadcast %cst_40 : f32 to vector<128x128xf32>
    %82 = arith.maximumf %80, %81 : vector<128x128xf32>
    %83 = vector.shape_cast %82 : vector<128x128xf32> to vector<2x8x8x128xf32>
    %84 = vector.extract_strided_slice %83 {offsets = [0, 0, 0, 0], sizes = [2, 8, 8, 8], strides = [1, 1, 1, 1]} : vector<2x8x8x128xf32> to vector<2x8x8x8xf32>
    %c0_41 = arith.constant 0 : index
    %c0_42 = arith.constant 0 : index
    %c0_43 = arith.constant 0 : index
    %c0_44 = arith.constant 0 : index
    %85 = vector.load %arg8[%c0_41, %c0_42, %c0_43, %c0_44] : memref<2x8x8x8xf32, #tpu.memory_space<vmem>>, vector<2x8x8x8xf32>
    tpu.vector_store %arg8[%c0_41, %c0_42, %c0_43, %c0_44], %84 {strides = array<i32>} : memref<2x8x8x8xf32, #tpu.memory_space<vmem>>, vector<2x8x8x8xf32>,
    return
  }
}

</mosaic_0001>

<bundles_post_ra>
// kernel: _lambda_.1
= control target key start
LH: loop header
LB: loop body
LE: loop exit
PB: predicated region body
PF: predicated region fallthrough
CT: control target
= control target key end

     0   :  { %vm794_vm3 = vsmask.f32 256  ;;  %vm795_vm4 = vsmask.f32 4368  ;;  %vm1005_vm6 = vsmask.f32 3328  ;;  %s4551_s1 = inlined_call_operand.vmem [shape: bf16[128,256], index: 1, kind: input, shape index: {}]   ;;  %s4552_s0 = inlined_call_operand.vmem [shape: bf16[2,8,8,128], index: 0, kind: input, shape index: {}]   ;;  %s4553_s4 = inlined_call_operand.vmem [shape: f32[1,128], index: 4, kind: input, shape index: {}, may-alias: {4,6}]   ;;  %s4554_s2 = inlined_call_operand.vmem [shape: f32[1,128], index: 2, kind: input, shape index: {}]   ;;  %s4555_s7 = inlined_call_operand.vmem [shape: bf16[1152,128], index: 7, kind: input, shape index: {}]   ;;  %s4556_s3 = inlined_call_operand.vmem [shape: f32[1,128], index: 3, kind: input, shape index: {}, may-alias: {3,5}]   ;;  %s4557_s6 = inlined_call_operand.vmem [shape: f32[1,128], index: 6, kind: input, shape index: {}, may-alias: {4,6}]   ;;  %s4558_s5 = inlined_call_operand.vmem [shape: f32[1,128], index: 5, kind: input, shape index: {}, may-alias: {3,5}]   ;;  %s4559_s8 = inlined_call_operand.vmem [shape: f32[2,8,8,8], index: 8, kind: output, shape index: {}]  }
   0x1   :  { %v2570_v0 = vld [vmem:[%s4551_s1 + $0x70] sm:$0xf]  ;;  %v2907_v1 = vld [vmem:[%s4551_s1 + $0x74] sm:$0xf0]  ;;  %v2562_v2 = vld [vmem:[%s4551_s1 + $0x60] sm:$0xf] }
   0x2   :  { %v2571_v3 = vor.u32 %v2907_v1, %v2570_v0  ;;  %v2905_v4 = vld [vmem:[%s4551_s1 + $0x64] sm:$0xf0]  ;;  %v2554_v6 = vld [vmem:[%s4551_s1 + $0x50] sm:$0xf]  ;;  %v2903_v7 = vld [vmem:[%s4551_s1 + $0x54] sm:$0xf0] }
   0x3   :  { %v2563_v5 = vor.u32 %v2905_v4, %v2562_v2  ;;  %v2555_v8 = vor.u32 %v2903_v7, %v2554_v6  ;;  %v2546_v9 = vld [vmem:[%s4551_s1 + $0x40] sm:$0xf]  ;;  %v2901_v10 = vld [vmem:[%s4551_s1 + $0x44] sm:$0xf0]  ;;  %v2538_v12 = vld [vmem:[%s4551_s1 + $0x30] sm:$0xf] }
   0x4   :  { %189 = vmatpush.bf16.msra.mxu0 %v2571_v3  ;;  %2980 = vmatpush.bf16.msra.mxu3 %v2571_v3  ;;  %v2547_v11 = vor.u32 %v2901_v10, %v2546_v9  ;;  %v2899_v13 = vld [vmem:[%s4551_s1 + $0x34] sm:$0xf0]  ;;  %v2530_v15 = vld [vmem:[%s4551_s1 + $0x20] sm:$0xf]  ;;  %v2897_v16 = vld [vmem:[%s4551_s1 + $0x24] sm:$0xf0] }
   0x5   :  { %v2539_v14 = vor.u32 %v2899_v13, %v2538_v12  ;;  %v2531_v17 = vor.u32 %v2897_v16, %v2530_v15  ;;  %v2522_v18 = vld [vmem:[%s4551_s1 + $0x10] sm:$0xf]  ;;  %v2895_v19 = vld [vmem:[%s4551_s1 + $0x14] sm:$0xf0]  ;;  %v2514_v21 = vld [vmem:[%s4551_s1] sm:$0xf] }
   0x6   :  { %v2523_v20 = vor.u32 %v2895_v19, %v2522_v18  ;;  %v2893_v22 = vld [vmem:[%s4551_s1 + $0x4] sm:$0xf0]  ;;  %v3111_v24 = vld [vmem:[%s4552_s0] sm:$0xff]  ;;  %v3116_v25 = vld [vmem:[%s4552_s0 + $0x10] sm:$0xff]  ;;  %vm1006_vm7 = vsmask.f32 7440 }
   0x7   :  { %v2515_v23 = vor.u32 %v2893_v22, %v2514_v21  ;;  %v3123_v26 = vld [vmem:[%s4552_s0 + $0x8] sm:$0xff]  ;;  %v3128_v27 = vld [vmem:[%s4552_s0 + $0x18] sm:$0xff]  ;;  %v3135_v28 = vld [vmem:[%s4552_s0 + $0x20] sm:$0xff]  ;;  %vm2459_vm12 = vcmask 64512  }
   0x8   :  { %190 = vmatpush.bf16.msra.mxu0 %v2563_v5  ;;  %2981 = vmatpush.bf16.msra.mxu3 %v2563_v5  ;;  %v3141_v29 = vld [vmem:[%s4552_s0 + $0x28] sm:$0xff]  ;;  %v3147_v30 = vld [vmem:[%s4552_s0 + $0x30] sm:$0xff]  ;;  %v3153_v31 = vld [vmem:[%s4552_s0 + $0x38] sm:$0xff] }
   0x9   :  { %v2906_v38 = vld [vmem:[%s4551_s1 + $0x74] sm:$0xf]  ;;  %v2572_v39 = vld [vmem:[%s4551_s1 + $0x78] sm:$0xf0]  ;;  %v2904_v42 = vld [vmem:[%s4551_s1 + $0x64] sm:$0xf] }
   0xa   :  { %v2575_v41 = vor.u32 %v2906_v38, %v2572_v39  ;;  %v2564_v43 = vld [vmem:[%s4551_s1 + $0x68] sm:$0xf0]  ;;  %v2902_v46 = vld [vmem:[%s4551_s1 + $0x54] sm:$0xf]  ;;  %v2556_v47 = vld [vmem:[%s4551_s1 + $0x58] sm:$0xf0] }
   0xb   :  { %v2567_v44 = vor.u32 %v2904_v42, %v2564_v43  ;;  %v2559_v48 = vor.u32 %v2902_v46, %v2556_v47  ;;  %v2900_v50 = vld [vmem:[%s4551_s1 + $0x44] sm:$0xf]  ;;  %v2548_v51 = vld [vmem:[%s4551_s1 + $0x48] sm:$0xf0]  ;;  %v2898_v55 = vld [vmem:[%s4551_s1 + $0x34] sm:$0xf] }
   0xc   :  { %191 = vmatpush.bf16.msra.mxu0 %v2555_v8  ;;  %2982 = vmatpush.bf16.msra.mxu3 %v2555_v8  ;;  %v2551_v52 = vor.u32 %v2900_v50, %v2548_v51  ;;  %v2540_v56 = vld [vmem:[%s4551_s1 + $0x38] sm:$0xf0]  ;;  %v2896_v62 = vld [vmem:[%s4551_s1 + $0x24] sm:$0xf]  ;;  %v2532_v63 = vld [vmem:[%s4551_s1 + $0x28] sm:$0xf0] }
   0xd   :  { %2988 = vmatpush.bf16.msra.mxu1 %v2575_v41  ;;  %v2543_v57 = vor.u32 %v2898_v55, %v2540_v56  ;;  %v2535_v0 = vor.u32 %v2896_v62, %v2532_v63  ;;  %v2894_v2 = vld [vmem:[%s4551_s1 + $0x14] sm:$0xf]  ;;  %v2524_v3 = vld [vmem:[%s4551_s1 + $0x18] sm:$0xf0]  ;;  %v2892_v7 = vld [vmem:[%s4551_s1 + $0x4] sm:$0xf] }
   0xe   :  { %v2527_v5 = vor.u32 %v2894_v2, %v2524_v3  ;;  %v2516_v8 = vld [vmem:[%s4551_s1 + $0x8] sm:$0xf0]  ;;  %vm3456_vm5 = vmor %vm794_vm3, %vm795_vm4 }
   0xf   :  { %v2519_v9 = vor.u32 %v2892_v7, %v2516_v8  ;;  %v2922_v8 = vld [vmem:[%s4555_s7 + $0x70] sm:$0xff]  ;;  %vm3599_vm8 = vmor %vm1005_vm6, %vm1006_vm7 }
  0x10   :  { %192 = vmatpush.bf16.msra.mxu0 %v2547_v11  ;;  %2983 = vmatpush.bf16.msra.mxu3 %v2547_v11 }
  0x11   :  { %2989 = vmatpush.bf16.msra.mxu1 %v2567_v44 }
  0x14   :  { %193 = vmatpush.bf16.msra.mxu0 %v2539_v14  ;;  %2984 = vmatpush.bf16.msra.mxu3 %v2539_v14 }
  0x15   :  { %2990 = vmatpush.bf16.msra.mxu1 %v2559_v48 }
  0x18   :  { %194 = vmatpush.bf16.msra.mxu0 %v2531_v17  ;;  %2985 = vmatpush.bf16.msra.mxu3 %v2531_v17 }
  0x19   :  { %2991 = vmatpush.bf16.msra.mxu1 %v2551_v52 }
  0x1c   :  { %195 = vmatpush.bf16.msra.mxu0 %v2523_v20  ;;  %2986 = vmatpush.bf16.msra.mxu3 %v2523_v20 }
  0x1d   :  { %2992 = vmatpush.bf16.msra.mxu1 %v2543_v57 }
  0x20   :  { %196 = vmatpush.bf16.msra.mxu0 %v2515_v23  ;;  %2987 = vmatpush.bf16.msra.mxu3 %v2515_v23 }
  0x21   :  { %2993 = vmatpush.bf16.msra.mxu1 %v2535_v0 }
  0x23   :  { %197 = vmatmul.bf16.vlgmr.msra.gmra.mxu0 %v3111_v24  ;;  %207 = vmatmul.bf16.vlgmr.msra.gmra.mxu3 %v3116_v25 }
  0x24   :  { %238 = vmatpush.bf16.msrb.mxu0 %v2575_v41 }
  0x25   :  { %2994 = vmatpush.bf16.msra.mxu1 %v2527_v5 }
  0x28   :  { %239 = vmatpush.bf16.msrb.mxu0 %v2567_v44 }
  0x29   :  { %2995 = vmatpush.bf16.msra.mxu1 %v2519_v9 }
  0x2c   :  { %240 = vmatpush.bf16.msrb.mxu0 %v2559_v48  ;;  %256 = vmatmul.bf16.vlgmr.msra.gmra.mxu1 %v3116_v25 }
  0x30   :  { %241 = vmatpush.bf16.msrb.mxu0 %v2551_v52 }
  0x33   :  { %202 = vmatmul.bf16.gmra.mxu0 %v3123_v26  ;;  %212 = vmatmul.bf16.gmra.mxu3 %v3128_v27 }
  0x34   :  { %242 = vmatpush.bf16.msrb.mxu0 %v2543_v57 }
  0x38   :  { %243 = vmatpush.bf16.msrb.mxu0 %v2535_v0 }
  0x3c   :  { %244 = vmatpush.bf16.msrb.mxu0 %v2527_v5  ;;  %261 = vmatmul.bf16.gmra.mxu1 %v3128_v27 }
  0x40   :  { %245 = vmatpush.bf16.msrb.mxu0 %v2519_v9 }
  0x43   :  { %217 = vmatmul.bf16.gmra.mxu3 %v3135_v28  ;;  %246 = vmatmul.bf16.vlgmr.msrb.gmra.mxu0 %v3111_v24 }
  0x4c   :  { %266 = vmatmul.bf16.gmra.mxu1 %v3135_v28 }
  0x53   :  { %222 = vmatmul.bf16.gmra.mxu3 %v3141_v29  ;;  %251 = vmatmul.bf16.gmra.mxu0 %v3123_v26 }
  0x5c   :  { %271 = vmatmul.bf16.gmra.mxu1 %v3141_v29 }
  0x63   :  { %227 = vmatmul.bf16.gmra.mxu3 %v3147_v30 }
  0x6c   :  { %276 = vmatmul.bf16.gmra.mxu1 %v3147_v30  ;;  %v2938_v30 = vld [vmem:[%s4555_s7 + $0xf0] sm:$0xff] }
  0x73   :  { %232 = vmatmul.bf16.gmra.mxu3 %v3153_v31 }
  0x7c   :  { %281 = vmatmul.bf16.gmra.mxu1 %v3153_v31  ;;  %v2916_v31 = vld [vmem:[%s4555_s7 + $0x40] sm:$0xff] }
  0xa0   :  { %v3162_v35 = vpop.f32.mrf.mxu0 }
  0xa6   :  { %v3156_v32 = vpop.f32.mrf.mxu3 }
  0xa8   :  { %v3174_v40 = vpop.f32.mrf.mxu0 }
  0xa9   :  { %v455_v54 = vadd.f32 %v3174_v40, %v3162_v35 }
  0xae   :  { %v3158_v33 = vpop.f32.mrf.mxu3 }
  0xb0   :  { %v3190_v49 = vpop.f32.mrf.mxu0 }
  0xb1   :  { %v456_v58 = vadd.f32 %v455_v54, %v3190_v49 }
  0xb6   :  { %v3160_v34 = vpop.f32.mrf.mxu3 }
  0xb8   :  { %v205_v59 = vpop.f32.mrf.mxu0 }
  0xb9   :  { %v457_v61 = vadd.f32 %v456_v58, %v205_v59 }
  0xbb   :  { %v458_v1 = vadd.f32 %v457_v61, %v3156_v32 }
  0xbd   :  { %v459_v6 = vadd.f32 %v458_v1, %v3158_v33 }
  0xbe   :  { %v3164_v36 = vpop.f32.mrf.mxu3 }
  0xbf   :  { %v460_v10 = vadd.f32 %v459_v6, %v3160_v34 }
  0xc1   :  { %v461_v12 = vadd.f32 %v460_v10, %v3164_v36 }
  0xc6   :  { %v3166_v37 = vpop.f32.mrf.mxu3 }
  0xc7   :  { %v462_v13 = vadd.f32 %v461_v12, %v3166_v37  ;;  %v2915_v12 = vld [vmem:[%s4555_s7 + $0x38] sm:$0xff] }
  0xc8   :  { %1860 = vmatpush.bf16.msra.mxu0 %v2915_v12  ;;  %2996 = vmatpush.bf16.msra.mxu2 %v2915_v12  ;;  %v2946_v12 = vld [vmem:[%s4555_s7 + $0x130] sm:$0xff] }
  0xce   :  { %v3182_v45 = vpop.f32.mrf.mxu3 }
  0xcf   :  { %v463_v14 = vadd.f32 %v462_v13, %v3182_v45  ;;  %v2939_v13 = vld [vmem:[%s4555_s7 + $0xf8] sm:$0xff] }
  0xd0   :  { %2007 = vmatpush.bf16.msrb.mxu1 %v2939_v13 }
  0xd4   :  { %2008 = vmatpush.bf16.msrb.mxu1 %v2938_v30 }
  0xd6   :  { %v3198_v53 = vpop.f32.mrf.mxu3 }
  0xd7   :  { %v464_v15 = vadd.f32 %v463_v14, %v3198_v53 }
  0xde   :  { %v3209_v60 = vpop.f32.mrf.mxu3 }
  0xdf   :  { %v465_v17 = vadd.f32 %v464_v15, %v3209_v60 }
  0xe6   :  { %v3224_v4 = vpop.f32.mrf.mxu3 }
  0xe7   :  { %v466_v18 = vadd.f32 %v465_v17, %v3224_v4 }
  0xee   :  { %v230_v11 = vpop.f32.mrf.mxu3 }
  0xef   :  { %v467_v19 = vadd.f32 %v466_v18, %v230_v11 }
  0xf6   :  { %v233_v16 = vpop.f32.mrf.mxu3 }
  0xf7   :  { %v468_v20 = vadd.f32 %v467_v19, %v233_v16  ;;  %v2914_v19 = vld [vmem:[%s4555_s7 + $0x30] sm:$0xff] }
  0xf8   :  { %1861 = vmatpush.bf16.msra.mxu0 %v2914_v19  ;;  %2997 = vmatpush.bf16.msra.mxu2 %v2914_v19 }
  0xfe   :  { %v235_v21 = vpop.f32.mrf.mxu3 }
  0xff   :  { %v469_v22 = vadd.f32 %v468_v20, %v235_v21 }
 0x101   :  { %v470_v23 = vrot.slane %v469_v22, 4 }
 0x103   :  { %v471_v24 = vadd.f32 %v470_v23, %v469_v22  ;;  %v2913_v23 = vld [vmem:[%s4555_s7 + $0x28] sm:$0xff] }
 0x104   :  { %1862 = vmatpush.bf16.msra.mxu0 %v2913_v23  ;;  %2998 = vmatpush.bf16.msra.mxu2 %v2913_v23 }
 0x105   :  { %v472_v25 = vrot.slane %v471_v24, 2 }
 0x107   :  { %v473_v38 = vadd.f32 %v472_v25, %v471_v24  ;;  %v2937_v24 = vld [vmem:[%s4555_s7 + $0xe8] sm:$0xff] }
 0x108   :  { %2009 = vmatpush.bf16.msrb.mxu1 %v2937_v24 }
 0x109   :  { %v474_v39 = vrot.slane %v473_v38, 1 }
 0x10b   :  { %v475_v41 = vadd.f32 %v474_v39, %v473_v38  ;;  %v2919_v38 = vld [vmem:[%s4555_s7 + $0x58] sm:$0xff] }
 0x10d   :  { %v476_v42 = vmul.f32 0.0078125, %v475_v41  ;;  %v2912_v41 = vld [vmem:[%s4555_s7 + $0x20] sm:$0xff] }
 0x10e   :  { %1863 = vmatpush.bf16.msra.mxu0 %v2912_v41  ;;  %2999 = vmatpush.bf16.msra.mxu2 %v2912_v41 }
 0x10f   :  { %v3245_v43 = vsub.f32 %v3162_v35, %v476_v42  ;;  %v3248_v44 = vsub.f32 %v3174_v40, %v476_v42  ;;  %v3252_v46 = vsub.f32 %v3190_v49, %v476_v42  ;;  %v3258_v47 = vsub.f32 %v205_v59, %v476_v42 }
 0x110   :  { %v3261_v48 = vsub.f32 %v3156_v32, %v476_v42  ;;  %v3266_v28 = vsub.f32 %v3158_v33, %v476_v42  ;;  %v3271_v51 = vsub.f32 %v3160_v34, %v476_v42  ;;  %v3276_v32 = vsub.f32 %v3164_v36, %v476_v42 }
 0x111   :  { %v493_v26 = vmul.f32 %v3245_v43, %v3245_v43  ;;  %v494_v27 = vmul.f32 %v3248_v44, %v3248_v44  ;;  %v495_v35 = vmul.f32 %v3252_v46, %v3252_v46  ;;  %v496_v49 = vmul.f32 %v3258_v47, %v3258_v47 }
 0x112   :  { %v497_v52 = vmul.f32 %v3261_v48, %v3261_v48  ;;  %v498_v55 = vmul.f32 %v3266_v28, %v3266_v28  ;;  %v3281_v33 = vsub.f32 %v3166_v37, %v476_v42  ;;  %v499_v57 = vmul.f32 %v3271_v51, %v3271_v51 }
 0x113   :  { %v509_v40 = vadd.f32 %v494_v27, %v493_v26  ;;  %v3287_v34 = vsub.f32 %v3182_v45, %v476_v42  ;;  %v500_v36 = vmul.f32 %v3276_v32, %v3276_v32  ;;  %v3292_v61 = vsub.f32 %v3198_v53, %v476_v42  ;;  %v2923_v53 = vld [vmem:[%s4555_s7 + $0x78] sm:$0xff]  ;;  %v2918_v27 = vld [vmem:[%s4555_s7 + $0x50] sm:$0xff] }
 0x114   :  { %v501_v37 = vmul.f32 %v3281_v33, %v3281_v33  ;;  %v3297_v63 = vsub.f32 %v3209_v60, %v476_v42  ;;  %v3302_v45 = vsub.f32 %v3224_v4, %v476_v42  ;;  %v3309_v3 = vsub.f32 %v230_v11, %v476_v42  ;;  %1909 = vmatpush.bf16.msrb.mxu3 %v2923_v53  ;;  %v2947_v53 = vld [vmem:[%s4555_s7 + $0x138] sm:$0xff] }
 0x115   :  { %v510_v50 = vadd.f32 %v509_v40, %v495_v35  ;;  %v502_v29 = vmul.f32 %v3287_v34, %v3287_v34  ;;  %v503_v1 = vmul.f32 %v3292_v61, %v3292_v61  ;;  %v3313_v6 = vsub.f32 %v233_v16, %v476_v42  ;;  %v2921_v16 = vld [vmem:[%s4555_s7 + $0x68] sm:$0xff]  ;;  %v2911_v40 = vld [vmem:[%s4555_s7 + $0x18] sm:$0xff] }
 0x116   :  { %v504_v60 = vmul.f32 %v3297_v63, %v3297_v63  ;;  %v505_v4 = vmul.f32 %v3302_v45, %v3302_v45  ;;  %v3320_v9 = vsub.f32 %v235_v21, %v476_v42  ;;  %v506_v10 = vmul.f32 %v3309_v3, %v3309_v3  ;;  %v2920_v21 = vld [vmem:[%s4555_s7 + $0x60] sm:$0xff]  ;;  %1864 = vmatpush.bf16.msra.mxu0 %v2911_v40 }
 0x117   :  { %v511_v54 = vadd.f32 %v510_v50, %v496_v49  ;;  %v507_v14 = vmul.f32 %v3313_v6, %v3313_v6  ;;  %v2936_v42 = vld [vmem:[%s4555_s7 + $0xe0] sm:$0xff]  ;;  %v2935_v49 = vld [vmem:[%s4555_s7 + $0xd8] sm:$0xff]  ;;  %3000 = vmatpush.bf16.msra.mxu2 %v2911_v40 }
 0x118   :  { %1910 = vmatpush.bf16.msrb.mxu3 %v2922_v8  ;;  %v508_v17 = vmul.f32 %v3320_v9, %v3320_v9  ;;  %2010 = vmatpush.bf16.msrb.mxu1 %v2936_v42 }
 0x119   :  { %v512_v56 = vadd.f32 %v511_v54, %v497_v52  ;;  %v2917_v52 = vld [vmem:[%s4555_s7 + $0x48] sm:$0xff] }
 0x11b   :  { %v513_v58 = vadd.f32 %v512_v56, %v498_v55  ;;  %v2910_v55 = vld [vmem:[%s4555_s7 + $0x10] sm:$0xff] }
 0x11c   :  { %1911 = vmatpush.bf16.msrb.mxu3 %v2921_v16  ;;  %2011 = vmatpush.bf16.msrb.mxu1 %v2935_v49  ;;  %v2934_v56 = vld [vmem:[%s4555_s7 + $0xd0] sm:$0xff]  ;;  %v3014_v49 = vmov 0.0|0.0  }
 0x11d   :  { %v514_v59 = vadd.f32 %v513_v58, %v499_v57  ;;  %1865 = vmatpush.bf16.msra.mxu0 %v2910_v55  ;;  %3001 = vmatpush.bf16.msra.mxu2 %v2910_v55  ;;  %v2909_v58 = vld [vmem:[%s4555_s7 + $0x8] sm:$0xff] }
 0x11f   :  { %v515_v62 = vadd.f32 %v514_v59, %v500_v36  ;;  %v2933_v36 = vld [vmem:[%s4555_s7 + $0xc8] sm:$0xff]  ;;  %v2908_v59 = vld [vmem:[%s4555_s7] sm:$0xff] }
 0x120   :  { %1912 = vmatpush.bf16.msrb.mxu3 %v2920_v21  ;;  %2012 = vmatpush.bf16.msrb.mxu1 %v2934_v56 }
 0x121   :  { %v516_v0 = vadd.f32 %v515_v62, %v501_v37  ;;  %1866 = vmatpush.bf16.msra.mxu0 %v2909_v58  ;;  %3002 = vmatpush.bf16.msra.mxu2 %v2909_v58  ;;  %v2932_v37 = vld [vmem:[%s4555_s7 + $0xc0] sm:$0xff] }
 0x123   :  { %v517_v2 = vadd.f32 %v516_v0, %v502_v29 }
 0x124   :  { %1913 = vmatpush.bf16.msrb.mxu3 %v2919_v38  ;;  %2013 = vmatpush.bf16.msrb.mxu1 %v2933_v36 }
 0x125   :  { %v518_v5 = vadd.f32 %v517_v2, %v503_v1  ;;  %1867 = vmatpush.bf16.msra.mxu0 %v2908_v59  ;;  %3003 = vmatpush.bf16.msra.mxu2 %v2908_v59  ;;  %v2931_v1 = vld [vmem:[%s4555_s7 + $0xb8] sm:$0xff] }
 0x127   :  { %v519_v7 = vadd.f32 %v518_v5, %v504_v60  ;;  %v2930_v60 = vld [vmem:[%s4555_s7 + $0xb0] sm:$0xff] }
 0x128   :  { %1914 = vmatpush.bf16.msrb.mxu3 %v2918_v27  ;;  %2014 = vmatpush.bf16.msrb.mxu1 %v2932_v37 }
 0x129   :  { %v520_v11 = vadd.f32 %v519_v7, %v505_v4  ;;  %1958 = vmatpush.bf16.msrb.mxu0 %v2931_v1  ;;  %2056 = vmatpush.bf16.msrb.mxu2 %v2947_v53  ;;  %v307_v4 = vld [vmem:[%s4556_s3] sm:$0x1] }
 0x12b   :  { %v521_v15 = vadd.f32 %v520_v11, %v506_v10  ;;  %v2929_v11 = vld [vmem:[%s4555_s7 + $0xa8] sm:$0xff] }
 0x12c   :  { %1915 = vmatpush.bf16.msrb.mxu3 %v2917_v52  ;;  %v2945_v52 = vld [vmem:[%s4555_s7 + $0x128] sm:$0xff] }
 0x12d   :  { %v522_v18 = vadd.f32 %v521_v15, %v507_v14  ;;  %1959 = vmatpush.bf16.msrb.mxu0 %v2930_v60  ;;  %v3419_v14 = vld [vmem:[%s4553_s4] ss:$0 sm:$0xff]  ;;  %2057 = vmatpush.bf16.msrb.mxu2 %v2946_v12 }
 0x12e   :  { %v2928_v15 = vld [vmem:[%s4555_s7 + $0xa0] sm:$0xff] }
 0x12f   :  { %v523_v20 = vadd.f32 %v522_v18, %v508_v17  ;;  %v3013_v18 = vmov 0  }
 0x130   :  { %1916 = vmatpush.bf16.msrb.mxu3 %v2916_v31  ;;  %v3429_v19 = vrot.slane %v3013_v18, 11  ;;  %v805_v38 = vrot.slane %v3013_v18, 7 }
 0x131   :  { %v524_v22 = vrot.slane %v523_v20, 4  ;;  %1960 = vmatpush.bf16.msrb.mxu0 %v2929_v11  ;;  %2058 = vmatpush.bf16.msrb.mxu2 %v2945_v52 }
 0x132   :  { %v809_v36 = vsel %vm3456_vm5, %v3429_v19, %v805_v38 }
 0x133   :  { %v525_v25 = vadd.f32 %v524_v22, %v523_v20  ;;  %v3501_v11 = vunpack.c.l.b16 %v809_v36 }
 0x135   :  { %v526_v39 = vrot.slane %v525_v25, 2  ;;  %1961 = vmatpush.bf16.msrb.mxu0 %v2928_v15  ;;  %4596 = vst [vmem:[#allocation4_spill] sm:$0xff] %v3501_v11 }
 0x137   :  { %v527_v26 = vadd.f32 %v526_v39, %v525_v25 }
 0x139   :  { %v528_v35 = vrot.slane %v527_v26, 1 }
 0x13b   :  { %v529_v50 = vadd.f32 %v528_v35, %v527_v26  ;;  %v2927_v35 = vld [vmem:[%s4555_s7 + $0x98] sm:$0xff] }
 0x13c   :  { %1962 = vmatpush.bf16.msrb.mxu0 %v2927_v35 }
 0x13d   :  { %v530_v54 = vmul.f32 0.0078125, %v529_v50  ;;  %v3465_v50 = vunpack.c.l.b16 %v3014_v49 }
 0x13f   :  { %v531_v57 = vadd.f32 1e-05, %v530_v54  ;;  %4595 = vst [vmem:[#allocation3_spill] sm:$0xff] %v3465_v50 }
 0x141   :  { %3009 = vrsqrt.f32 %v531_v57  ;;  %vm538_vm1 = vweird.f32 %v531_v57 }
 0x147   :  { %v3010_v62 = vpop.eup %3009 }
 0x148   :  { %v533_v29 = vmul.f32 %v3010_v62, %v531_v57  ;;  %vm539_vm0 = vweird.f32 %v3010_v62  ;;  %v2926_v57 = vld [vmem:[%s4555_s7 + $0x90] sm:$0xff] }
 0x149   :  { %vm540_vm2 = vmor %vm538_vm1, %vm539_vm0  ;;  %1963 = vmatpush.bf16.msrb.mxu0 %v2926_v57 }
 0x14a   :  { %v534_v0 = vmul.f32 %v3010_v62, %v533_v29 }
 0x14c   :  { %v535_v2 = vmul.f32 0.5, %v534_v0 }
 0x14e   :  { %v536_v5 = vsub.f32 1.5, %v535_v2 }
 0x150   :  { %v537_v7 = vmul.f32 %v3010_v62, %v536_v5 }
 0x152   :  { %v541_v8 = vsel %vm540_vm2, %v3010_v62, %v537_v7 }
 0x153   :  { %v542_v10 = vmul.f32 %v541_v8, %v307_v4 }
 0x155   :  { %v3414_v13 = vperm.slane %v542_v10, 0 }
 0x157   :  { %v561_v16 = vmul.f32 %v3414_v13, %v3320_v9  ;;  %v546_v17 = vmul.f32 %v3414_v13, %v3245_v43  ;;  %v549_v30 = vmul.f32 %v3414_v13, %v3258_v47  ;;  %v550_v20 = vmul.f32 %v3414_v13, %v3261_v48 }
 0x158   :  { %v547_v21 = vmul.f32 %v3414_v13, %v3248_v44  ;;  %v548_v9 = vmul.f32 %v3414_v13, %v3252_v46  ;;  %v551_v23 = vmul.f32 %v3414_v13, %v3266_v28  ;;  %v552_v47 = vmul.f32 %v3414_v13, %v3271_v51  ;;  %v2959_v28 = vld [vmem:[%s4555_s7 + $0x198] sm:$0xff] }
 0x159   :  { %v3440_v22 = vadd.f32 %v3419_v14, %v561_v16  ;;  %v565_v43 = vadd.f32 %v3419_v14, %v546_v17  ;;  %v568_v48 = vadd.f32 %v3419_v14, %v549_v30  ;;  %v569_v24 = vadd.f32 %v3419_v14, %v550_v20  ;;  %v2925_v16 = vld [vmem:[%s4555_s7 + $0x88] sm:$0xff] }
 0x15a   :  { %v566_v44 = vadd.f32 %v3419_v14, %v547_v21  ;;  %v567_v46 = vadd.f32 %v3419_v14, %v548_v9  ;;  %v570_v39 = vadd.f32 %v3419_v14, %v551_v23  ;;  %v571_v41 = vadd.f32 %v3419_v14, %v552_v47  ;;  %1964 = vmatpush.bf16.msrb.mxu0 %v2925_v16 }
 0x15b   :  { %v581_v25 = vmax.f32 %v565_v43, 0.0  ;;  %v584_v51 = vmax.f32 %v568_v48, 0.0  ;;  %v585_v42 = vmax.f32 %v569_v24, 0.0 }
 0x15c   :  { %v582_v26 = vmax.f32 %v566_v44, 0.0  ;;  %v583_v27 = vmax.f32 %v567_v46, 0.0  ;;  %v586_v59 = vmax.f32 %v570_v39, 0.0  ;;  %v587_v0 = vmax.f32 %v571_v41, 0.0  ;;  %v2924_v39 = vld [vmem:[%s4555_s7 + $0x80] sm:$0xff] }
 0x15d   :  { %v3463_v40 = vpack.c.bf16 %v581_v25, %v581_v25  ;;  %v3470_v54 = vpack.c.bf16 %v584_v51, %v584_v51  ;;  %v3472_v55 = vpack.c.bf16 %v585_v42, %v585_v42 }
 0x15e   :  { %v3474_v56 = vpack.c.bf16 %v582_v26, %v582_v26  ;;  %v3486_v29 = vpack.c.bf16 %v583_v27, %v583_v27  ;;  %v3514_v21 = vpack.c.bf16 %v586_v59, %v586_v59  ;;  %v3521_v23 = vpack.c.bf16 %v587_v0, %v587_v0  ;;  %1965 = vmatpush.bf16.msrb.mxu0 %v2924_v39 }
 0x15f   :  { %v816_v31 = vshrl.u32 %v3463_v40, 16  ;;  %v4576_v58 = vunpack.c.l.b16 %v3463_v40  ;;  %v855_v37 = vshrl.u32 %v3470_v54, 16  ;;  %v868_v62 = vshrl.u32 %v3472_v55, 16 }
 0x160   :  { %v819_v1 = vshll.u32 %v3463_v40, 16  ;;  %v829_v60 = vshrl.u32 %v3474_v56, 16  ;;  %v858_v4 = vshll.u32 %v3470_v54, 16  ;;  %v871_v8 = vshll.u32 %v3472_v55, 16 }
 0x161   :  { %v1304_v2 = vpack.c.b16 %v4576_v58, %v3465_v50  ;;  %v818_v53 = vrot.slane %v816_v31, 7  ;;  %v857_v5 = vrot.slane %v855_v37, 7  ;;  %v870_v7 = vrot.slane %v868_v62, 7 }
 0x162   :  { %v831_v12 = vrot.slane %v829_v60, 7  ;;  %v832_v15 = vshll.u32 %v3474_v56, 16  ;;  %v842_v20 = vshrl.u32 %v3486_v29, 16  ;;  %v881_v44 = vshrl.u32 %v3514_v21, 16 }
 0x163   :  { %1917 = vmatmul.bf16.vlgmr.msrb.gmra.mxu3 %v1304_v2  ;;  %v821_v10 = vor.u32 %v819_v1, %v818_v53  ;;  %v860_v17 = vor.u32 %v858_v4, %v857_v5  ;;  %v873_v30 = vor.u32 %v871_v8, %v870_v7  ;;  %v894_v35 = vshrl.u32 %v3521_v23, 16  ;;  %v2944_v5 = vld [vmem:[%s4555_s7 + $0x120] sm:$0xff] }
 0x164   :  { %v834_v43 = vor.u32 %v832_v15, %v831_v12  ;;  %v844_v42 = vrot.slane %v842_v20, 7  ;;  %v883_v26 = vrot.slane %v881_v44, 7  ;;  %v845_v52 = vshll.u32 %v3486_v29, 16  ;;  %2059 = vmatpush.bf16.msrb.mxu2 %v2944_v5 }
 0x165   :  { %v822_v9 = vsel %vm3456_vm5, %v3429_v19, %v821_v10  ;;  %v861_v48 = vsel %vm3456_vm5, %v3429_v19, %v860_v17  ;;  %v874_v24 = vsel %vm3456_vm5, %v3429_v19, %v873_v30  ;;  %v884_v57 = vshll.u32 %v3514_v21, 16 }
 0x166   :  { %v1241_v47 = vunpack.c.l.b16 %v822_v9  ;;  %v3530_v46 = vunpack.c.l.b16 %v861_v48  ;;  %v3532_v25 = vunpack.c.l.b16 %v874_v24  ;;  %v835_v38 = vsel %vm3456_vm5, %v3429_v19, %v834_v43 }
 0x167   :  { %v1242_v51 = vunpack.c.l.b16 %v835_v38  ;;  %v896_v36 = vrot.slane %v894_v35, 7  ;;  %v554_v59 = vmul.f32 %v3414_v13, %v3281_v33  ;;  %v847_v0 = vor.u32 %v845_v52, %v844_v42 }
 0x168   :  { %v1256_v41 = vpack.c.b16 %v1241_v47, %v3501_v11  ;;  %v3547_v27 = vpack.c.b16 %v3532_v25, %v3530_v46  ;;  %v886_v2 = vor.u32 %v884_v57, %v883_v26  ;;  %v4574_v53 = vshll.u32 %v3521_v23, 16 }
 0x169   :  { %v1354_v49 = vpack.c.b16 %v1242_v51, %v1241_v47  ;;  %v4575_v7 = vunpack.c.l.b16 %v3474_v56  ;;  %v4562_v10 = vunpack.c.l.b16 %v3486_v29  ;;  %v573_v12 = vadd.f32 %v3419_v14, %v554_v59 }
 0x16a   :  { %4597 = vst [vmem:[#allocation5_spill] sm:$0xff] %v3547_v27  ;;  %1868 = vmatmul.bf16.vlgmr.msra.gmra.mxu0 %v1256_v41  ;;  %1878 = vmatmul.bf16.vlgmr.msra.gmra.mxu2 %v3547_v27  ;;  %v899_v33 = vor.u32 %v4574_v53, %v896_v36  ;;  %v1017_v16 = vrot.slane %v816_v31, 4  ;;  %v1018_v17 = vrot.slane %v819_v1, 5  ;;  %v596_v30 = vmax.f32 %v3440_v22, 0.0 }
 0x16b   :  { %2015 = vmatmul.bf16.vlgmr.msrb.gmra.mxu1 %v1354_v49  ;;  %v589_v9 = vmax.f32 %v573_v12, 0.0  ;;  %v3572_v43 = vrot.slane %v3013_v18, 5  ;;  %v848_v47 = vsel %vm3456_vm5, %v3429_v19, %v847_v0  ;;  %v887_v48 = vsel %vm3456_vm5, %v3429_v19, %v886_v2 }
 0x16c   :  { %v1019_v24 = vor.u32 %v1018_v17, %v1017_v16  ;;  %v3584_v22 = vpack.c.b16 %v4562_v10, %v4575_v7  ;;  %v555_v1 = vmul.f32 %v3414_v13, %v3287_v34  ;;  %v556_v38 = vmul.f32 %v3414_v13, %v3292_v61 }
 0x16d   :  { %v3586_v31 = vpack.c.bf16 %v589_v9, %v589_v9  ;;  %v3594_v39 = vmul.f32 %v3414_v13, %v3309_v3  ;;  %v900_v41 = vsel %vm3456_vm5, %v3429_v19, %v899_v33  ;;  %v1008_v26 = vrot.slane %v3013_v18, 4 }
 0x16e   :  { %v1020_v49 = vrot.slane %v1019_v24, 4  ;;  %v3604_v36 = vpack.c.bf16 %v596_v30, %v596_v30  ;;  %v1243_v34 = vunpack.c.l.b16 %v848_v47  ;;  %v3607_v61 = vunpack.c.l.b16 %v887_v48 }
 0x16f   :  { %v574_v3 = vadd.f32 %v3419_v14, %v555_v1  ;;  %v920_v59 = vshrl.u32 %v3586_v31, 16  ;;  %v575_v0 = vadd.f32 %v3419_v14, %v556_v38  ;;  %v1026_v2 = vrot.slane %v829_v60, 4 }
 0x170   :  { %v1027_v18 = vrot.slane %v832_v15, 5  ;;  %v3616_v5 = vunpack.c.l.b16 %v900_v41  ;;  %v1025_v12 = vsel %vm3599_vm8, %v1020_v49, %v3572_v43  ;;  %v1035_v16 = vrot.slane %v842_v20, 4 }
 0x171   :  { %v590_v33 = vmax.f32 %v574_v3, 0.0  ;;  %v591_v17 = vmax.f32 %v575_v0, 0.0  ;;  %v1036_v9 = vrot.slane %v845_v52, 5  ;;  %v553_v47 = vmul.f32 %v3414_v13, %v3276_v32 }
 0x172   :  { %v1028_v30 = vor.u32 %v1027_v18, %v1026_v2  ;;  %v3625_v60 = vpack.c.b16 %v1243_v34, %v1242_v51  ;;  %v4561_v15 = vunpack.c.l.b16 %v3470_v54  ;;  %v1010_v48 = vor.u32 %v3572_v43, %v1008_v26 }
 0x173   :  { %1922 = vmatmul.bf16.gmra.mxu3 %v3584_v22  ;;  %v3629_v24 = vpack.c.bf16 %v590_v33, %v590_v33  ;;  %v922_v1 = vrot.slane %v920_v59, 7  ;;  %v3633_v38 = vpack.c.bf16 %v591_v17, %v591_v17  ;;  %v572_v41 = vadd.f32 %v3419_v14, %v553_v47 }
 0x174   :  { %v1029_v20 = vrot.slane %v1028_v30, 4  ;;  %v3638_v52 = vpack.c.b16 %v3616_v5, %v3607_v61  ;;  %v3640_v32 = vunpack.c.l.b16 %v1025_v12  ;;  %v1037_v49 = vor.u32 %v1036_v9, %v1035_v16  ;;  %v2943_v30 = vld [vmem:[%s4555_s7 + $0x118] sm:$0xff] }
 0x175   :  { %v4567_v51 = vshrl.u32 %v3629_v24, 16  ;;  %v1355_v26 = vpack.c.b16 %v3530_v46, %v1243_v34  ;;  %v4560_v3 = vunpack.c.l.b16 %v3472_v55  ;;  %v4577_v0 = vshll.u32 %v3586_v31, 16  ;;  %2060 = vmatpush.bf16.msrb.mxu2 %v2943_v30 }
 0x176   :  { %4600 = vst [vmem:[#allocation6_spill] sm:$0xff] %v3638_v52  ;;  %v1034_v2 = vsel %vm3599_vm8, %v1029_v20, %v3572_v43  ;;  %v3652_v18 = vmul.f32 %v3414_v13, %v3313_v6  ;;  %v588_v16 = vmax.f32 %v572_v41, 0.0  ;;  %v1011_v34 = vrot.slane %v1010_v48, 4 }
 0x177   :  { %v3656_v33 = vunpack.c.l.b16 %v1034_v2  ;;  %v925_v46 = vor.u32 %v4577_v0, %v922_v1  ;;  %v4563_v17 = vshrl.u32 %v3633_v38, 16  ;;  %v557_v6 = vmul.f32 %v3414_v13, %v3297_v63 }
 0x178   :  { %v935_v9 = vrot.slane %v4567_v51, 7  ;;  %v1038_v47 = vrot.slane %v1037_v49, 4  ;;  %v3670_v41 = vpack.c.bf16 %v588_v16, %v588_v16  ;;  %v3676_v48 = vpack.c.b16 %v4560_v3, %v4561_v15  ;;  %v3739_v51 = vpop.f32.mrf.mxu1 }
 0x179   :  { %v1356_v1 = vpack.c.b16 %v3607_v61, %v3532_v25  ;;  %v558_v63 = vmul.f32 %v3414_v13, %v3302_v45  ;;  %v576_v49 = vadd.f32 %v3419_v14, %v557_v6  ;;  %v4568_v2 = vunpack.c.l.b16 %v3521_v23  ;;  %4601 = vst [vmem:[#allocation7_spill] sm:$0xff] %v3739_v51 }
 0x17a   :  { %1873 = vmatmul.bf16.gmra.mxu0 %v3625_v60  ;;  %1883 = vmatmul.bf16.gmra.mxu2 %v3638_v52  ;;  %v4565_v16 = vshll.u32 %v3629_v24, 16  ;;  %v4564_v20 = vshrl.u32 %v3670_v41, 16  ;;  %v926_v12 = vsel %vm3456_vm5, %v3429_v19, %v925_v46  ;;  %v1016_v25 = vsel %vm3599_vm8, %v1011_v34, %v3572_v43 }
 0x17b   :  { %2020 = vmatmul.bf16.gmra.mxu1 %v1355_v26  ;;  %v4571_v26 = vunpack.c.l.b16 %v3514_v21  ;;  %v948_v45 = vrot.slane %v4563_v17, 7  ;;  %v577_v13 = vadd.f32 %v3419_v14, %v558_v63  ;;  %v4566_v30 = vshll.u32 %v3633_v38, 16 }
 0x17c   :  { %v938_v61 = vor.u32 %v4565_v16, %v935_v9  ;;  %v1043_v6 = vsel %vm3599_vm8, %v1038_v47, %v3572_v43  ;;  %v1160_v46 = vrot.slane %v4564_v20, 7  ;;  %v592_v3 = vmax.f32 %v576_v49, 0.0  ;;  %v2942_v49 = vld [vmem:[%s4555_s7 + $0x110] sm:$0xff] }
 0x17d   :  { %v593_v15 = vmax.f32 %v577_v13, 0.0  ;;  %v1044_v34 = vrot.slane %v855_v37, 4  ;;  %v1045_v63 = vrot.slane %v858_v4, 5  ;;  %v3709_v9 = vunpack.c.l.b16 %v926_v12  ;;  %2061 = vmatpush.bf16.msrb.mxu2 %v2942_v49 }
 0x17e   :  { %v3711_v10 = vunpack.c.l.b16 %v1016_v25  ;;  %v4569_v17 = vshll.u32 %v3670_v41, 16  ;;  %v4570_v47 = vunpack.c.l.b16 %v3586_v31  ;;  %v951_v37 = vor.u32 %v4566_v30, %v948_v45 }
 0x17f   :  { %v3720_v13 = vunpack.c.l.b16 %v1043_v6  ;;  %v3722_v4 = vpack.c.bf16 %v592_v3, %v592_v3  ;;  %v3724_v20 = vpack.c.bf16 %v593_v15, %v593_v15  ;;  %v939_v12 = vsel %vm3456_vm5, %v3429_v19, %v938_v61 }
 0x180   :  { %v1163_v25 = vor.u32 %v4569_v17, %v1160_v46  ;;  %v1053_v16 = vrot.slane %v868_v62, 4  ;;  %v578_v45 = vadd.f32 %v3419_v14, %v3594_v39  ;;  %v1046_v15 = vor.u32 %v1045_v63, %v1044_v34 }
 0x181   :  { %v4572_v6 = vshrl.u32 %v3722_v4, 16  ;;  %v4573_v3 = vshrl.u32 %v3724_v20, 16  ;;  %v1054_v30 = vrot.slane %v871_v8, 5  ;;  %v1260_v61 = vpack.c.b16 %v3709_v9, %v3501_v11 }
 0x182   :  { %v1336_v46 = vpack.c.b16 %v3640_v32, %v3711_v10  ;;  %v3749_v62 = vpack.c.b16 %v4568_v2, %v4571_v26  ;;  %v3754_v39 = vpack.c.b16 %v4570_v47, %v3465_v50  ;;  %v962_v34 = vshll.u32 %v3722_v4, 16 }
 0x183   :  { %1927 = vmatmul.bf16.gmra.mxu3 %v3676_v48  ;;  %v961_v8 = vrot.slane %v4572_v6, 7  ;;  %v974_v63 = vrot.slane %v4573_v3, 7  ;;  %v4581_v49 = vshll.u32 %v3724_v20, 16  ;;  %v952_v2 = vsel %vm3456_vm5, %v3429_v19, %v951_v37 }
 0x184   :  { %4602 = vst [vmem:[#allocation8_spill] sm:$0xff] %v3749_v62  ;;  %v3765_v17 = vunpack.c.l.b16 %v939_v12  ;;  %v3769_v47 = vpack.c.b16 %v3720_v13, %v3656_v33  ;;  %v1164_v26 = vsel %vm3456_vm5, %v3429_v19, %v1163_v25  ;;  %v1047_v53 = vrot.slane %v1046_v15, 4 }
 0x185   :  { %v964_v6 = vor.u32 %v962_v34, %v961_v8  ;;  %v977_v3 = vor.u32 %v4581_v49, %v974_v63  ;;  %v1055_v7 = vor.u32 %v1054_v30, %v1053_v16  ;;  %v579_v37 = vadd.f32 %v3419_v14, %v3652_v18 }
 0x186   :  { %v594_v12 = vmax.f32 %v578_v45, 0.0  ;;  %v1062_v58 = vrot.slane %v881_v44, 4  ;;  %v1063_v0 = vrot.slane %v884_v57, 5  ;;  %v3782_v25 = vunpack.c.l.b16 %v952_v2  ;;  %v2941_v44 = vld [vmem:[%s4555_s7 + $0x108] sm:$0xff] }
 0x187   :  { %v965_v16 = vsel %vm3456_vm5, %v3429_v19, %v964_v6  ;;  %v978_v14 = vsel %vm3456_vm5, %v3429_v19, %v977_v3  ;;  %v1056_v30 = vrot.slane %v1055_v7, 4  ;;  %2062 = vmatpush.bf16.msrb.mxu2 %v2941_v44  ;;  %v4579_v45 = vunpack.c.l.b16 %v3722_v4 }
 0x188   :  { %v3795_v18 = vunpack.c.l.b16 %v965_v16  ;;  %v3797_v57 = vunpack.c.l.b16 %v978_v14  ;;  %v3799_v2 = vpack.c.bf16 %v594_v12, %v594_v12  ;;  %v4578_v6 = vunpack.c.l.b16 %v3724_v20  ;;  %v3825_v12 = vpop.f32.mrf.mxu1 }
 0x189   :  { %v1064_v8 = vor.u32 %v1063_v0, %v1062_v58  ;;  %v3815_v63 = vpack.c.b16 %v3782_v25, %v3765_v17  ;;  %4605 = vst [vmem:[#allocation11_spill] sm:$0xff] %v3825_v12  ;;  %v3833_v44 = vrot.slane %v962_v34, 5  ;;  %v1071_v34 = vrot.slane %v894_v35, 4 }
 0x18a   :  { %1966 = vmatmul.bf16.vlgmr.msrb.gmra.mxu0 %v1336_v46  ;;  %1888 = vmatmul.bf16.gmra.mxu2 %v1260_v61  ;;  %v3784_v46 = vunpack.c.l.b16 %v1164_v26  ;;  %v1052_v26 = vsel %vm3599_vm8, %v1047_v53, %v3572_v43  ;;  %v3808_v3 = vpack.c.b16 %v3797_v57, %v3795_v18  ;;  %v4580_v61 = vshrl.u32 %v3799_v2, 16 }
 0x18b   :  { %2025 = vmatmul.bf16.gmra.mxu1 %v1356_v1  ;;  %v595_v1 = vmax.f32 %v579_v37, 0.0  ;;  %v3823_v37 = vpack.c.b16 %v4578_v6, %v4579_v45  ;;  %v988_v0 = vshll.u32 %v3799_v2, 16  ;;  %v3838_v6 = vunpack.c.l.b16 %v1052_v26 }
 0x18c   :  { %4603 = vst [vmem:[#allocation9_spill] sm:$0xff] %v3784_v46  ;;  %v1357_v16 = vpack.c.b16 %v3784_v46, %v3616_v5  ;;  %v987_v58 = vrot.slane %v4580_v61, 7  ;;  %v1089_v45 = vrot.slane %v920_v59, 4  ;;  %v1065_v61 = vrot.slane %v1064_v8, 4 }
 0x18d   :  { %v3810_v15 = vpack.c.bf16 %v595_v1, %v595_v1  ;;  %v1061_v1 = vsel %vm3599_vm8, %v1056_v30, %v3572_v43  ;;  %v4606_v49 = vshll.u32 %v3586_v31, 16  ;;  %v4607_v30 = vunpack.c.l.b16 %v3463_v40 }
 0x18e   :  { %v990_v5 = vor.u32 %v988_v0, %v987_v58  ;;  %v4608_v26 = vunpack.c.l.b16 %v3474_v56  ;;  %v4609_v8 = vshll.u32 %v3521_v23, 16  ;;  %v4610_v40 = vshrl.u32 %v3629_v24, 16 }
 0x18f   :  { %4604 = vst [vmem:[#allocation10_spill] sm:$0xff] %v3810_v15  ;;  %v998_v14 = vshrl.u32 %v3810_v15, 16  ;;  %v1001_v53 = vshll.u32 %v3810_v15, 16  ;;  %v1090_v12 = vrot.slane %v4606_v49, 5  ;;  %v4591_v35 = vunpack.c.l.b16 %v3810_v15 }
 0x190   :  { %v3852_v51 = vpack.c.b16 %v4608_v26, %v4607_v30  ;;  %v991_v58 = vsel %vm3456_vm5, %v3429_v19, %v990_v5  ;;  %v1072_v46 = vrot.slane %v4609_v8, 5  ;;  %v1098_v56 = vrot.slane %v4610_v40, 4 }
 0x191   :  { %v1000_v7 = vrot.slane %v998_v14, 7  ;;  %v3861_v52 = vunpack.c.l.b16 %v991_v58  ;;  %v1091_v49 = vor.u32 %v1090_v12, %v1089_v45  ;;  %v4611_v30 = vshll.u32 %v3629_v24, 16 }
 0x192   :  { %v4612_v5 = vunpack.c.l.b16 %v3799_v2  ;;  %v4613_v45 = vshrl.u32 %v3633_v38, 16  ;;  %v4614_v50 = vshll.u32 %v3724_v20, 16  ;;  %v4615_v15 = vshll.u32 %v3633_v38, 16 }
 0x193   :  { %1932 = vmatmul.bf16.gmra.mxu3 %v3749_v62  ;;  %v1003_v11 = vor.u32 %v1001_v53, %v1000_v7  ;;  %v1099_v26 = vrot.slane %v4611_v30, 5  ;;  %v1070_v7 = vsel %vm3599_vm8, %v1065_v61, %v3572_v43  ;;  %v1092_v40 = vrot.slane %v1091_v49, 4 }
 0x194   :  { %v3877_v58 = vpack.c.b16 %v4591_v35, %v4612_v5  ;;  %v1107_v12 = vrot.slane %v4613_v45, 4  ;;  %v1126_v27 = vrot.slane %v4614_v50, 5  ;;  %v3887_v61 = vunpack.c.l.b16 %v1061_v1 }
 0x195   :  { %v1004_v59 = vsel %vm3456_vm5, %v3429_v19, %v1003_v11  ;;  %v1100_v11 = vor.u32 %v1099_v26, %v1098_v56  ;;  %v1073_v62 = vor.u32 %v1072_v46, %v1071_v34  ;;  %v1108_v5 = vrot.slane %v4615_v15, 5  ;;  %v3905_v46 = vpop.f32.mrf.mxu1 }
 0x196   :  { %v3881_v8 = vunpack.c.l.b16 %v1004_v59  ;;  %v1097_v49 = vsel %vm3599_vm8, %v1092_v40, %v3572_v43  ;;  %v4616_v26 = vunpack.c.l.b16 %v3486_v29  ;;  %v4617_v50 = vunpack.c.l.b16 %v3470_v54  ;;  %4618 = vst [vmem:[#allocation12_spill] sm:$0xff] %v3905_v46  ;;  %v2940_v29 = vld [vmem:[%s4555_s7 + $0x100] sm:$0xff] }
 0x197   :  { %v1101_v56 = vrot.slane %v1100_v11, 4  ;;  %v3908_v15 = vunpack.c.l.b16 %v1070_v7  ;;  %v3910_v34 = vunpack.c.l.b16 %v1097_v49  ;;  %v1109_v45 = vor.u32 %v1108_v5, %v1107_v12  ;;  %2063 = vmatpush.bf16.msrb.mxu2 %v2940_v29 }
 0x198   :  { %v3894_v59 = vpack.c.b16 %v3881_v8, %v3861_v52  ;;  %v3903_v1 = vpack.c.b16 %v4617_v50, %v4616_v26  ;;  %v4619_v35 = vshrl.u32 %v3722_v4, 16  ;;  %v4620_v40 = vshrl.u32 %v3724_v20, 16 }
 0x199   :  { %v1106_v54 = vsel %vm3599_vm8, %v1101_v56, %v3572_v43  ;;  %v4621_v7 = vunpack.c.l.b16 %v3472_v55  ;;  %v4622_v49 = vunpack.c.l.b16 %v3514_v21  ;;  %v1144_v5 = vrot.slane %v1001_v53, 5 }
 0x19a   :  { %1971 = vmatmul.bf16.gmra.mxu0 %v3769_v47  ;;  %1893 = vmatmul.bf16.gmra.mxu2 %v3815_v63  ;;  %v1116_v30 = vrot.slane %v4619_v35, 4  ;;  %v1125_v11 = vrot.slane %v4620_v40, 4  ;;  %v1135_v35 = vrot.slane %v988_v0, 5  ;;  %v1340_v26 = vpack.c.b16 %v3910_v34, %v3711_v10 }
 0x19b   :  { %2030 = vmatmul.bf16.gmra.mxu1 %v1357_v16  ;;  %v3926_v12 = vpack.c.b16 %v4622_v49, %v4621_v7  ;;  %v1110_v50 = vrot.slane %v1109_v45, 4  ;;  %v3932_v56 = vunpack.c.l.b16 %v1106_v54  ;;  %v4623_v55 = vshrl.u32 %v3799_v2, 16 }
 0x19c   :  { %v1118_v40 = vor.u32 %v3833_v44, %v1116_v30  ;;  %v1127_v46 = vor.u32 %v1126_v27, %v1125_v11  ;;  %v1143_v49 = vrot.slane %v998_v14, 4  ;;  %v4592_v53 = vunpack.c.l.b16 %v3670_v41 }
 0x19d   :  { %v1134_v21 = vrot.slane %v4623_v55, 4  ;;  %v1115_v7 = vsel %vm3599_vm8, %v1110_v50, %v3572_v43  ;;  %v1074_v45 = vrot.slane %v1073_v62, 4  ;;  %v4624_v27 = vshll.u32 %v3670_v41, 16 }
 0x19e   :  { %v3943_v29 = vunpack.c.l.b16 %v1115_v7  ;;  %v1119_v54 = vrot.slane %v1118_v40, 4  ;;  %v1128_v16 = vrot.slane %v1127_v46, 4  ;;  %v1145_v11 = vor.u32 %v1144_v5, %v1143_v49  ;;  %v2955_v40 = vld [vmem:[%s4555_s7 + $0x178] sm:$0xff] }
 0x19f   :  { %v1179_v44 = vrot.slane %v4624_v27, 5  ;;  %v1136_v30 = vor.u32 %v1135_v35, %v1134_v21  ;;  %v4625_v55 = vunpack.c.l.b16 %v3521_v23  ;;  %v4626_v35 = vunpack.c.l.b16 %v3586_v31  ;;  %2105 = vmatpush.bf16.msra.mxu3 %v2955_v40 }
 0x1a0   :  { %v3955_v50 = vpack.c.b16 %v3943_v29, %v3932_v56  ;;  %v1124_v62 = vsel %vm3599_vm8, %v1119_v54, %v3572_v43  ;;  %v1133_v46 = vsel %vm3599_vm8, %v1128_v16, %v3572_v43  ;;  %v4627_v23 = vunpack.c.l.b16 %v3629_v24 }
 0x1a1   :  { %v3951_v14 = vpack.c.b16 %v4592_v53, %v4625_v55  ;;  %v3973_v21 = vunpack.c.l.b16 %v1124_v62  ;;  %v3975_v7 = vunpack.c.l.b16 %v1133_v46  ;;  %v1137_v49 = vrot.slane %v1136_v30, 4  ;;  %v3989_v62 = vpop.f32.mrf.mxu1  ;;  %v2954_v30 = vld [vmem:[%s4555_s7 + $0x170] sm:$0xff] }
 0x1a2   :  { %v3967_v5 = vpack.c.b16 %v4627_v23, %v4626_v35  ;;  %v1146_v54 = vrot.slane %v1145_v11, 4  ;;  %v1079_v31 = vsel %vm3599_vm8, %v1074_v45, %v3572_v43  ;;  %v1174_v16 = vshll.u32 %v3604_v36, 16  ;;  %4631 = vst [vmem:[#allocation13_spill] sm:$0xff] %v3989_v62  ;;  %v4656_v62 = vld [vmem:[#allocation10_spill] sm:$0xff] }
 0x1a3   :  { %1937 = vmatmul.bf16.gmra.mxu3 %v3754_v39  ;;  %v4628_v27 = vshrl.u32 %v3670_v41, 16  ;;  %v4629_v39 = vunpack.c.l.b16 %v3633_v38  ;;  %v4630_v35 = vunpack.c.l.b16 %v3722_v4  ;;  %v3996_v45 = vpack.c.b16 %v3975_v7, %v3973_v21 }
 0x1a4   :  { %v1142_v11 = vsel %vm3599_vm8, %v1137_v49, %v3572_v43  ;;  %v1151_v4 = vsel %vm3599_vm8, %v1146_v54, %v3572_v43  ;;  %v4633_v53 = vunpack.c.l.b16 %v3799_v2  ;;  %v4018_v49 = vpack.c.b16 %v3887_v61, %v3838_v6  ;;  %2106 = vmatpush.bf16.msra.mxu3 %v2954_v30  ;;  %v2971_v30 = vld [vmem:[%s4555_s7 + $0x1f8] sm:$0xff] }
 0x1a5   :  { %v1178_v55 = vrot.slane %v4628_v27, 4  ;;  %v3987_v23 = vpack.c.b16 %v4630_v35, %v4629_v39  ;;  %v4006_v40 = vunpack.c.l.b16 %v1142_v11  ;;  %v4008_v27 = vunpack.c.l.b16 %v1151_v4  ;;  %2203 = vmatpush.bf16.msra.mxu1 %v2971_v30 }
 0x1a6   :  { %v4632_v35 = vunpack.c.l.b16 %v3724_v20  ;;  %v4634_v46 = vshrl.u32 %v3604_v36, 16  ;;  %v1188_v2 = vrot.slane %v1174_v16, 5  ;;  %v4636_v30 = vunpack.c.l.b16 %v3633_v38  ;;  %v2968_v38 = vld [vmem:[%s4555_s7 + $0x1e0] sm:$0xff] }
 0x1a7   :  { %v1180_v39 = vor.u32 %v1179_v44, %v1178_v55  ;;  %v4026_v4 = vpack.c.b16 %v4008_v27, %v4006_v40  ;;  %v1358_v55 = vpack.c.b16 %v3765_v17, %v3709_v9  ;;  %v2953_v17 = vld [vmem:[%s4555_s7 + $0x168] sm:$0xff] }
 0x1a8   :  { %v4014_v0 = vpack.c.b16 %v4633_v53, %v4632_v35  ;;  %v1187_v11 = vrot.slane %v4634_v46, 4  ;;  %v4032_v53 = vunpack.c.l.b16 %v1079_v31  ;;  %v2979_v31 = vld [vmem:[%s4555_s7 + $0x238] sm:$0xff]  ;;  %2107 = vmatpush.bf16.msra.mxu3 %v2953_v17  ;;  %v2969_v17 = vld [vmem:[%s4555_s7 + $0x1e8] sm:$0xff] }
 0x1a9   :  { %v1181_v44 = vrot.slane %v1180_v39, 4  ;;  %2252 = vmatpush.bf16.msra.mxu2 %v2979_v31  ;;  %v4635_v31 = vunpack.c.l.b16 %v3629_v24  ;;  %v2951_v24 = vld [vmem:[%s4555_s7 + $0x158] sm:$0xff] }
 0x1aa   :  { %1976 = vmatmul.bf16.gmra.mxu0 %v4018_v49  ;;  %v1189_v35 = vor.u32 %v1188_v2, %v1187_v11  ;;  %1898 = vmatmul.bf16.gmra.mxu2 %v3808_v3  ;;  %v2963_v11 = vld [vmem:[%s4555_s7 + $0x1b8] sm:$0xff]  ;;  %v2952_v2 = vld [vmem:[%s4555_s7 + $0x160] sm:$0xff] }
 0x1ab   :  { %v1186_v46 = vsel %vm3599_vm8, %v1181_v44, %v3572_v43  ;;  %2035 = vmatmul.bf16.gmra.mxu1 %v1358_v55  ;;  %v2970_v55 = vld [vmem:[%s4555_s7 + $0x1f0] sm:$0xff]  ;;  %2154 = vmatpush.bf16.msra.mxu0 %v2963_v11  ;;  %v4076_v54 = vpack.c.b16 %v4636_v30, %v4635_v31  ;;  %v2967_v31 = vld [vmem:[%s4555_s7 + $0x1d8] sm:$0xff]  ;;  %v2949_v30 = vld [vmem:[%s4555_s7 + $0x148] sm:$0xff] }
 0x1ac   :  { %v4041_v39 = vunpack.c.l.b16 %v1186_v46  ;;  %v1190_v9 = vrot.slane %v1189_v35, 4  ;;  %v4065_v35 = vpop.f32.mrf.mxu1  ;;  %2204 = vmatpush.bf16.msra.mxu1 %v2970_v55  ;;  %2108 = vmatpush.bf16.msra.mxu3 %v2952_v2  ;;  %v2950_v11 = vld [vmem:[%s4555_s7 + $0x150] sm:$0xff]  ;;  %v1359_v2 = vpack.c.b16 %v3795_v18, %v3782_v25  ;;  %v4646_v44 = vld [vmem:[#allocation8_spill] sm:$0xff] }
 0x1ad   :  { %v2962_v25 = vld [vmem:[%s4555_s7 + $0x1b0] sm:$0xff] }
 0x1ae   :  { %v1195_v46 = vsel %vm3599_vm8, %v1190_v9, %v3572_v43  ;;  %v4094_v9 = vpack.c.b16 %v4032_v53, %v3908_v15  ;;  %v2966_v18 = vld [vmem:[%s4555_s7 + $0x1d0] sm:$0xff] }
 0x1af   :  { %v4067_v20 = vunpack.c.l.b16 %v1195_v46  ;;  %v2978_v46 = vld [vmem:[%s4555_s7 + $0x230] sm:$0xff]  ;;  %2155 = vmatpush.bf16.msra.mxu0 %v2962_v25  ;;  %v4639_v25 = vpack.c.b16 %v3861_v52, %v3797_v57 }
 0x1b0   :  { %2205 = vmatpush.bf16.msra.mxu1 %v2969_v17  ;;  %2109 = vmatpush.bf16.msra.mxu3 %v2951_v24  ;;  %v4120_v17 = vpop.f32.mrf.mxu0  ;;  %v2948_v24 = vld [vmem:[%s4555_s7 + $0x140] sm:$0xff] }
 0x1b1   :  { %2253 = vmatpush.bf16.msra.mxu2 %v2978_v46  ;;  %v2964_v46 = vld [vmem:[%s4555_s7 + $0x1c0] sm:$0xff] }
 0x1b3   :  { %1942 = vmatmul.bf16.gmra.mxu3 %v4076_v54 }
 0x1b4   :  { %v4099_v55 = vpop.f32.mrf.mxu1  ;;  %2206 = vmatpush.bf16.msra.mxu1 %v2968_v38  ;;  %2110 = vmatpush.bf16.msra.mxu3 %v2950_v11  ;;  %v2965_v11 = vld [vmem:[%s4555_s7 + $0x1c8] sm:$0xff] }
 0x1b5   :  { %4637 = vst [vmem:[#allocation14_spill] sm:$0xff] %v4099_v55 }
 0x1b8   :  { %2207 = vmatpush.bf16.msra.mxu1 %v2967_v31  ;;  %2111 = vmatpush.bf16.msra.mxu3 %v2949_v30  ;;  %v4638_v31 = vshrl.u32 %v3604_v36, 16 }
 0x1ba   :  { %1981 = vmatmul.bf16.gmra.mxu0 %v4094_v9  ;;  %1903 = vmatmul.bf16.gmra.mxu2 %v3894_v59  ;;  %v1173_v30 = vrot.slane %v4638_v31, 7  ;;  %v2960_v31 = vld [vmem:[%s4555_s7 + $0x1a0] sm:$0xff] }
 0x1bb   :  { %2040 = vmatmul.bf16.gmra.mxu1 %v1359_v2  ;;  %v4131_v2 = vpop.f32.mrf.mxu0 }
 0x1bc   :  { %2208 = vmatpush.bf16.msra.mxu1 %v2966_v18  ;;  %v4125_v38 = vpop.f32.mrf.mxu1  ;;  %2112 = vmatpush.bf16.msra.mxu3 %v2948_v24  ;;  %v2977_v18 = vld [vmem:[%s4555_s7 + $0x228] sm:$0xff] }
 0x1bd   :  { %v2961_v24 = vld [vmem:[%s4555_s7 + $0x1a8] sm:$0xff]  ;;  %2254 = vmatpush.bf16.msra.mxu2 %v2977_v18 }
 0x1be   :  { %2156 = vmatpush.bf16.msra.mxu0 %v2961_v24  ;;  %v2957_v18 = vld [vmem:[%s4555_s7 + $0x188] sm:$0xff] }
 0x1c0   :  { %2209 = vmatpush.bf16.msra.mxu1 %v2965_v11 }
 0x1c2   :  { %2157 = vmatpush.bf16.msra.mxu0 %v2960_v31  ;;  %v2956_v31 = vld [vmem:[%s4555_s7 + $0x180] sm:$0xff] }
 0x1c3   :  { %1947 = vmatmul.bf16.gmra.mxu3 %v3823_v37 }
 0x1c4   :  { %2210 = vmatpush.bf16.msra.mxu1 %v2964_v46  ;;  %v4151_v11 = vpop.f32.mrf.mxu1 }
 0x1c5   :  { %4640 = vst [vmem:[#allocation15_spill] sm:$0xff] %v4151_v11  ;;  %v4650_v11 = vld [vmem:[#allocation3_spill] sm:$0xff] }
 0x1c6   :  { %2158 = vmatpush.bf16.msra.mxu0 %v2959_v28 }
 0x1ca   :  { %1986 = vmatmul.bf16.gmra.mxu0 %v1340_v26  ;;  %2064 = vmatmul.bf16.vlgmr.msrb.gmra.mxu2 %v3852_v51  ;;  %v1176_v51 = vor.u32 %v1174_v16, %v1173_v30  ;;  %v4156_v26 = vpop.f32.mrf.mxu0 }
 0x1cb   :  { %2045 = vmatmul.bf16.gmra.mxu1 %v4639_v25 }
 0x1cc   :  { %v1177_v52 = vsel %vm3456_vm5, %v3429_v19, %v1176_v51  ;;  %v4163_v46 = vpop.f32.mrf.mxu1  ;;  %v2976_v19 = vld [vmem:[%s4555_s7 + $0x220] sm:$0xff] }
 0x1cd   :  { %v4161_v57 = vunpack.c.l.b16 %v1177_v52  ;;  %2255 = vmatpush.bf16.msra.mxu2 %v2976_v19 }
 0x1cf   :  { %v1361_v16 = vpack.c.b16 %v4161_v57, %v3881_v8  ;;  %v2958_v8 = vld [vmem:[%s4555_s7 + $0x190] sm:$0xff] }
 0x1d0   :  { %2159 = vmatpush.bf16.msra.mxu0 %v2958_v8 }
 0x1d2   :  { %v4178_v30 = vpop.f32.mrf.mxu0 }
 0x1d3   :  { %1952 = vmatmul.bf16.gmra.mxu3 %v3877_v58 }
 0x1d4   :  { %v4180_v25 = vpop.f32.mrf.mxu1  ;;  %2160 = vmatpush.bf16.msra.mxu0 %v2957_v18 }
 0x1d5   :  { %4641 = vst [vmem:[#allocation16_spill] sm:$0xff] %v4180_v25  ;;  %v4649_v25 = vunpack.c.l.b16 %v3670_v41 }
 0x1d7   :  { %v1418_v55 = vpack.c.b16 %v4650_v11, %v4649_v25 }
 0x1d8   :  { %2161 = vmatpush.bf16.msra.mxu0 %v2956_v31 }
 0x1da   :  { %1991 = vmatmul.bf16.gmra.mxu0 %v3955_v50  ;;  %2069 = vmatmul.bf16.gmra.mxu2 %v3903_v1  ;;  %v4642_v1 = vpack.c.b16 %v3656_v33, %v3640_v32  ;;  %v2975_v32 = vld [vmem:[%s4555_s7 + $0x218] sm:$0xff] }
 0x1db   :  { %2050 = vmatmul.bf16.gmra.mxu1 %v1361_v16  ;;  %2256 = vmatpush.bf16.msra.mxu2 %v2975_v32 }
 0x1dc   :  { %v4195_v16 = vpop.f32.mrf.mxu1 }
 0x1e3   :  { %2113 = vmatmul.bf16.vlgmr.msra.gmra.mxu3 %v4642_v1  ;;  %v4643_v1 = vpack.c.b16 %v3838_v6, %v3720_v13 }
 0x1e4   :  { %v4205_v18 = vpop.f32.mrf.mxu1 }
 0x1e5   :  { %4644 = vst [vmem:[#allocation17_spill] sm:$0xff] %v4205_v18  ;;  %v4648_v18 = vld [vmem:[#allocation5_spill] sm:$0xff] }
 0x1e6   :  { %v1918_v24 = vpop.f32.mrf.mxu3 }
 0x1e7   :  { %v1869_v51 = vpop.f32.mrf.mxu0 }
 0x1e8   :  { %v1919_v52 = vadd.f32 %v1918_v24, %v1869_v51 }
 0x1ea   :  { %1996 = vmatmul.bf16.gmra.mxu0 %v3996_v45  ;;  %2074 = vmatmul.bf16.gmra.mxu2 %v3926_v12 }
 0x1eb   :  { %2211 = vmatmul.bf16.vlgmr.msra.gmra.mxu1 %v3584_v22  ;;  %v2974_v22 = vld [vmem:[%s4555_s7 + $0x210] sm:$0xff] }
 0x1ec   :  { %2257 = vmatpush.bf16.msra.mxu2 %v2974_v22  ;;  %v2016_v13 = vpop.f32.mrf.mxu1  ;;  %v2973_v22 = vld [vmem:[%s4555_s7 + $0x208] sm:$0xff] }
 0x1ed   :  { %v1879_v33 = vpop.f32.mrf.mxu2 }
 0x1ee   :  { %v1920_v19 = vpop.f32.mrf.mxu3 }
 0x1ef   :  { %v1871_v28 = vpop.f32.mrf.mxu0 }
 0x1f0   :  { %v1921_v8 = vadd.f32 %v1920_v19, %v1871_v28  ;;  %2258 = vmatpush.bf16.msra.mxu2 %v2973_v22 }
 0x1f3   :  { %2118 = vmatmul.bf16.gmra.mxu3 %v4643_v1  ;;  %v4645_v1 = vpack.c.b16 %v3908_v15, %v3887_v61 }
 0x1f5   :  { %v1881_v24 = vpop.f32.mrf.mxu2 }
 0x1f6   :  { %v1923_v12 = vpop.f32.mrf.mxu3 }
 0x1f7   :  { %v1874_v51 = vpop.f32.mrf.mxu0 }
 0x1f8   :  { %v1924_v31 = vadd.f32 %v1923_v12, %v1874_v51 }
 0x1fa   :  { %2001 = vmatmul.bf16.gmra.mxu0 %v4026_v4  ;;  %2079 = vmatmul.bf16.gmra.mxu2 %v3951_v14 }
 0x1fb   :  { %2216 = vmatmul.bf16.gmra.mxu1 %v3676_v48  ;;  %v2018_v48 = vpop.f32.mrf.mxu1 }
 0x1fd   :  { %v1884_v32 = vpop.f32.mrf.mxu2 }
 0x1fe   :  { %v1925_v19 = vpop.f32.mrf.mxu3 }
 0x1ff   :  { %v1876_v6 = vpop.f32.mrf.mxu0 }
 0x200   :  { %v1926_v28 = vadd.f32 %v1925_v19, %v1876_v6 }
 0x203   :  { %2123 = vmatmul.bf16.gmra.mxu3 %v4645_v1 }
 0x205   :  { %v1886_v12 = vpop.f32.mrf.mxu2 }
 0x206   :  { %v1928_v51 = vpop.f32.mrf.mxu3 }
 0x207   :  { %v1929_v43 = vadd.f32 %v1928_v51, %v1879_v33  ;;  %v1967_v14 = vpop.f32.mrf.mxu0  ;;  %v2021_v33 = vpop.f32.mrf.mxu1 }
 0x208   :  { %v1968_v42 = vadd.f32 %v1967_v14, %v1919_v52  ;;  %v4647_v52 = vpack.c.b16 %v4041_v39, %v4032_v53 }
 0x20a   :  { %2162 = vmatmul.bf16.vlgmr.msra.gmra.mxu0 %v3625_v60  ;;  %2084 = vmatmul.bf16.gmra.mxu2 %v3967_v5 }
 0x20b   :  { %2221 = vmatmul.bf16.gmra.mxu1 %v4646_v44 }
 0x20d   :  { %v1889_v19 = vpop.f32.mrf.mxu2 }
 0x20e   :  { %v1930_v6 = vpop.f32.mrf.mxu3 }
 0x20f   :  { %v1931_v61 = vadd.f32 %v1930_v6, %v1881_v24  ;;  %v1969_v15 = vpop.f32.mrf.mxu0  ;;  %v2023_v53 = vpop.f32.mrf.mxu1 }
 0x210   :  { %v1970_v1 = vadd.f32 %v1969_v15, %v1921_v8  ;;  %v2972_v8 = vld [vmem:[%s4555_s7 + $0x200] sm:$0xff] }
 0x211   :  { %2259 = vmatpush.bf16.msra.mxu2 %v2972_v8 }
 0x213   :  { %2128 = vmatmul.bf16.gmra.mxu3 %v4647_v52 }
 0x215   :  { %v1891_v60 = vpop.f32.mrf.mxu2 }
 0x216   :  { %v1933_v51 = vpop.f32.mrf.mxu3 }
 0x217   :  { %v1934_v5 = vadd.f32 %v1933_v51, %v1884_v32  ;;  %v1972_v14 = vpop.f32.mrf.mxu0  ;;  %v2026_v15 = vpop.f32.mrf.mxu1  ;;  %v4652_v51 = vld [vmem:[#allocation6_spill] sm:$0xff] }
 0x218   :  { %v1973_v44 = vadd.f32 %v1972_v14, %v1924_v31  ;;  %v2017_v14 = vadd.f32 %v2016_v13, %v1968_v42  ;;  %v4655_v42 = vld [vmem:[#allocation4_spill] sm:$0xff] }
 0x21a   :  { %2167 = vmatmul.bf16.gmra.mxu0 %v4648_v18  ;;  %2089 = vmatmul.bf16.gmra.mxu2 %v3987_v23  ;;  %v4651_v18 = vpack.c.b16 %v3932_v56, %v3910_v34  ;;  %v4653_v56 = vpack.c.b16 %v3973_v21, %v3943_v29  ;;  %v2022_v29 = vadd.f32 %v2021_v33, %v1973_v44 }
 0x21b   :  { %2226 = vmatmul.bf16.gmra.mxu1 %v1418_v55 }
 0x21d   :  { %v1894_v24 = vpop.f32.mrf.mxu2 }
 0x21e   :  { %v1935_v22 = vpop.f32.mrf.mxu3 }
 0x21f   :  { %v1936_v32 = vadd.f32 %v1935_v22, %v1886_v12  ;;  %v1974_v6 = vpop.f32.mrf.mxu0  ;;  %v2028_v34 = vpop.f32.mrf.mxu1 }
 0x220   :  { %v1975_v31 = vadd.f32 %v1974_v6, %v1926_v28 }
 0x223   :  { %2133 = vmatmul.bf16.gmra.mxu3 %v4651_v18 }
 0x225   :  { %v1896_v41 = vpop.f32.mrf.mxu2 }
 0x226   :  { %v1938_v25 = vpop.f32.mrf.mxu3 }
 0x227   :  { %v1939_v23 = vadd.f32 %v1938_v25, %v1889_v19  ;;  %v1977_v55 = vpop.f32.mrf.mxu0  ;;  %v2019_v19 = vadd.f32 %v2018_v48, %v1970_v1 }
 0x228   :  { %v1978_v52 = vadd.f32 %v1977_v55, %v1929_v43  ;;  %v1373_v43 = vunpack.c.l.b16 %v3604_v36 }
 0x22a   :  { %2172 = vmatmul.bf16.gmra.mxu0 %v4652_v51  ;;  %2094 = vmatmul.bf16.gmra.mxu2 %v4014_v0 }
 0x22b   :  { %2231 = vmatmul.bf16.gmra.mxu1 %v4076_v54  ;;  %v4654_v54 = vld [vmem:[#allocation9_spill] sm:$0xff] }
 0x22c   :  { %v1410_v13 = vpack.c.b16 %v4655_v42, %v4654_v54 }
 0x22d   :  { %v1899_v12 = vpop.f32.mrf.mxu2 }
 0x22e   :  { %v1940_v8 = vpop.f32.mrf.mxu3 }
 0x22f   :  { %v1941_v28 = vadd.f32 %v1940_v8, %v1891_v60  ;;  %v1979_v22 = vpop.f32.mrf.mxu0  ;;  %v4657_v60 = vunpack.c.l.b16 %v4656_v62 }
 0x230   :  { %v1980_v6 = vadd.f32 %v1979_v22, %v1931_v61  ;;  %v2031_v61 = vpop.f32.mrf.mxu1 }
 0x231   :  { %v1381_v8 = vpack.c.b16 %v1373_v43, %v4657_v60 }
 0x233   :  { %2138 = vmatmul.bf16.gmra.mxu3 %v4653_v56 }
 0x235   :  { %v1901_v18 = vpop.f32.mrf.mxu2 }
 0x236   :  { %v1943_v25 = vpop.f32.mrf.mxu3 }
 0x237   :  { %v1944_v55 = vadd.f32 %v1943_v25, %v1894_v24  ;;  %v1982_v0 = vpop.f32.mrf.mxu0  ;;  %v2024_v24 = vadd.f32 %v2023_v53, %v1975_v31 }
 0x238   :  { %v1983_v51 = vadd.f32 %v1982_v0, %v1934_v5  ;;  %v4658_v5 = vpack.c.b16 %v4006_v40, %v3975_v7  ;;  %v2033_v56 = vpop.f32.mrf.mxu1 }
 0x23a   :  { %2177 = vmatmul.bf16.gmra.mxu0 %v1410_v13  ;;  %2099 = vmatmul.bf16.gmra.mxu2 %v1381_v8 }
 0x23b   :  { %2236 = vmatmul.bf16.gmra.mxu1 %v3823_v37  ;;  %v2027_v37 = vadd.f32 %v2026_v15, %v1978_v52 }
 0x23d   :  { %v1904_v21 = vpop.f32.mrf.mxu2 }
 0x23e   :  { %v1945_v48 = vpop.f32.mrf.mxu3 }
 0x23f   :  { %v1946_v36 = vadd.f32 %v1945_v48, %v1896_v41  ;;  %v1984_v1 = vpop.f32.mrf.mxu0  ;;  %v2029_v41 = vadd.f32 %v2028_v34, %v1980_v6 }
 0x240   :  { %v1985_v22 = vadd.f32 %v1984_v1, %v1936_v32  ;;  %v2036_v53 = vpop.f32.mrf.mxu1 }
 0x242   :  { %v2034_v1 = vadd.f32 %v2033_v56, %v1985_v22 }
 0x243   :  { %2143 = vmatmul.bf16.gmra.mxu3 %v4658_v5 }
 0x245   :  { %v1906_v25 = vpop.f32.mrf.mxu2 }
 0x246   :  { %v1948_v62 = vpop.f32.mrf.mxu3 }
 0x247   :  { %v1949_v0 = vadd.f32 %v1948_v62, %v1899_v12  ;;  %v1987_v54 = vpop.f32.mrf.mxu0  ;;  %v4659_v12 = vpack.c.b16 %v4067_v20, %v4008_v27 }
 0x248   :  { %v1988_v13 = vadd.f32 %v1987_v54, %v1939_v23  ;;  %v2038_v52 = vpop.f32.mrf.mxu1 }
 0x24a   :  { %2182 = vmatmul.bf16.gmra.mxu0 %v3815_v63  ;;  %2260 = vmatmul.bf16.vlgmr.msra.gmra.mxu2 %v3769_v47 }
 0x24b   :  { %2241 = vmatmul.bf16.gmra.mxu1 %v3877_v58  ;;  %v1419_v58 = vpack.c.b16 %v4650_v11, %v1373_v43 }
 0x24d   :  { %v2065_v33 = vpop.f32.mrf.mxu2 }
 0x24e   :  { %v1950_v44 = vpop.f32.mrf.mxu3  ;;  %v2066_v32 = vadd.f32 %v2065_v33, %v2017_v14  ;;  %v2032_v14 = vadd.f32 %v2031_v61, %v1983_v51 }
 0x24f   :  { %v1951_v31 = vadd.f32 %v1950_v44, %v1901_v18  ;;  %v1989_v7 = vpop.f32.mrf.mxu0 }
 0x250   :  { %v1990_v40 = vadd.f32 %v1989_v7, %v1941_v28 }
 0x252   :  { %v2039_v22 = vadd.f32 %v2038_v52, %v1990_v40 }
 0x253   :  { %2148 = vmatmul.bf16.gmra.mxu3 %v4659_v12 }
 0x255   :  { %v2067_v23 = vpop.f32.mrf.mxu2 }
 0x256   :  { %v1953_v60 = vpop.f32.mrf.mxu3  ;;  %v2068_v63 = vadd.f32 %v2067_v23, %v2019_v19  ;;  %v2041_v19 = vpop.f32.mrf.mxu1 }
 0x257   :  { %v1954_v8 = vadd.f32 %v1953_v60, %v1904_v21  ;;  %v1992_v47 = vpop.f32.mrf.mxu0 }
 0x258   :  { %v1993_v15 = vadd.f32 %v1992_v47, %v1944_v55 }
 0x25a   :  { %2187 = vmatmul.bf16.gmra.mxu0 %v3808_v3  ;;  %2265 = vmatmul.bf16.gmra.mxu2 %v4018_v49  ;;  %v2037_v49 = vadd.f32 %v2036_v53, %v1988_v13  ;;  %v2042_v13 = vadd.f32 %v2041_v19, %v1993_v15 }
 0x25b   :  { %2246 = vmatmul.bf16.gmra.mxu1 %v1419_v58 }
 0x25d   :  { %v2070_v28 = vpop.f32.mrf.mxu2 }
 0x25e   :  { %v1955_v6 = vpop.f32.mrf.mxu3  ;;  %v2071_v34 = vadd.f32 %v2070_v28, %v2022_v29  ;;  %v2043_v11 = vpop.f32.mrf.mxu1 }
 0x25f   :  { %v1956_v27 = vadd.f32 %v1955_v6, %v1906_v25  ;;  %v1994_v18 = vpop.f32.mrf.mxu0 }
 0x260   :  { %v1995_v48 = vadd.f32 %v1994_v18, %v1946_v36 }
 0x262   :  { %v2044_v23 = vadd.f32 %v2043_v11, %v1995_v48 }
 0x265   :  { %v2072_v21 = vpop.f32.mrf.mxu2 }
 0x266   :  { %v2114_v5 = vpop.f32.mrf.mxu3  ;;  %v2073_v55 = vadd.f32 %v2072_v21, %v2024_v24 }
 0x267   :  { %v2115_v62 = vadd.f32 %v2114_v5, %v2066_v32  ;;  %v1997_v54 = vpop.f32.mrf.mxu0 }
 0x268   :  { %v1998_v3 = vadd.f32 %v1997_v54, %v1949_v0  ;;  %v2046_v0 = vpop.f32.mrf.mxu1 }
 0x26a   :  { %2192 = vmatmul.bf16.gmra.mxu0 %v3894_v59  ;;  %2270 = vmatmul.bf16.gmra.mxu2 %v4094_v9  ;;  %v1411_v59 = vpack.c.b16 %v4655_v42, %v4161_v57  ;;  %v4660_v9 = vpack.c.b16 %v3711_v10, %v4041_v39  ;;  %v2047_v39 = vadd.f32 %v2046_v0, %v1998_v3 }
 0x26d   :  { %v2075_v43 = vpop.f32.mrf.mxu2 }
 0x26e   :  { %v2116_v51 = vpop.f32.mrf.mxu3  ;;  %v2076_v61 = vadd.f32 %v2075_v43, %v2027_v37 }
 0x26f   :  { %v2117_v29 = vadd.f32 %v2116_v51, %v2068_v63  ;;  %v1999_v25 = vpop.f32.mrf.mxu0 }
 0x270   :  { %v2000_v36 = vadd.f32 %v1999_v25, %v1951_v31  ;;  %v2048_v60 = vpop.f32.mrf.mxu1 }
 0x275   :  { %v2077_v56 = vpop.f32.mrf.mxu2 }
 0x276   :  { %v2119_v33 = vpop.f32.mrf.mxu3  ;;  %v4262_v44 = vadd.f32 %v2077_v56, %v2029_v41 }
 0x277   :  { %v2120_v24 = vadd.f32 %v2119_v33, %v2071_v34  ;;  %v2002_v32 = vpop.f32.mrf.mxu0  ;;  %v2049_v34 = vadd.f32 %v2048_v60, %v2000_v36 }
 0x278   :  { %v2003_v7 = vadd.f32 %v2002_v32, %v1954_v8  ;;  %v2051_v15 = vpop.f32.mrf.mxu1  ;;  %v4661_v32 = vpack.c.b16 %v3711_v10, %v4067_v20 }
 0x27a   :  { %2197 = vmatmul.bf16.gmra.mxu0 %v1411_v59  ;;  %2275 = vmatmul.bf16.gmra.mxu2 %v4660_v9  ;;  %v2052_v21 = vadd.f32 %v2051_v15, %v2003_v7 }
 0x27d   :  { %v2080_v37 = vpop.f32.mrf.mxu2 }
 0x27e   :  { %v2121_v53 = vpop.f32.mrf.mxu3  ;;  %v4269_v31 = vadd.f32 %v2080_v37, %v2032_v14 }
 0x27f   :  { %v2122_v40 = vadd.f32 %v2121_v53, %v2073_v55  ;;  %v2004_v41 = vpop.f32.mrf.mxu0 }
 0x280   :  { %v2005_v12 = vadd.f32 %v2004_v41, %v1956_v27  ;;  %v2053_v27 = vpop.f32.mrf.mxu1 }
 0x282   :  { %v2054_v3 = vadd.f32 %v2053_v27, %v2005_v12 }
 0x285   :  { %v2082_v63 = vpop.f32.mrf.mxu2 }
 0x286   :  { %v2124_v8 = vpop.f32.mrf.mxu3  ;;  %v4271_v47 = vadd.f32 %v2082_v63, %v2034_v1 }
 0x287   :  { %v2125_v57 = vadd.f32 %v2124_v8, %v2076_v61  ;;  %v2163_v42 = vpop.f32.mrf.mxu0 }
 0x288   :  { %v2164_v52 = vadd.f32 %v2163_v42, %v2115_v62  ;;  %v2212_v62 = vpop.f32.mrf.mxu1 }
 0x28a   :  { %2280 = vmatmul.bf16.gmra.mxu2 %v3955_v50  ;;  %v2213_v61 = vadd.f32 %v2212_v62, %v2164_v52 }
 0x28d   :  { %v2085_v58 = vpop.f32.mrf.mxu2 }
 0x28e   :  { %v4274_v28 = vadd.f32 %v2085_v58, %v2037_v49  ;;  %v2126_v60 = vpop.f32.mrf.mxu3 }
 0x28f   :  { %v2165_v14 = vpop.f32.mrf.mxu0 }
 0x290   :  { %v2166_v6 = vadd.f32 %v2165_v14, %v2117_v29  ;;  %v2214_v29 = vpop.f32.mrf.mxu1 }
 0x295   :  { %v2087_v18 = vpop.f32.mrf.mxu2 }
 0x296   :  { %v4276_v48 = vadd.f32 %v2087_v18, %v2039_v22  ;;  %v2129_v52 = vpop.f32.mrf.mxu3 }
 0x297   :  { %v2168_v19 = vpop.f32.mrf.mxu0 }
 0x298   :  { %v2169_v1 = vadd.f32 %v2168_v19, %v2120_v24  ;;  %v2217_v22 = vpop.f32.mrf.mxu1  ;;  %v2127_v19 = vadd.f32 %v2126_v60, %v4262_v44 }
 0x29a   :  { %2285 = vmatmul.bf16.gmra.mxu2 %v3996_v45  ;;  %v2215_v45 = vadd.f32 %v2214_v29, %v2166_v6  ;;  %v2218_v24 = vadd.f32 %v2217_v22, %v2169_v1 }
 0x29d   :  { %v2090_v5 = vpop.f32.mrf.mxu2 }
 0x29e   :  { %v4279_v55 = vadd.f32 %v2090_v5, %v2042_v13 }
 0x29f   :  { %v2170_v50 = vpop.f32.mrf.mxu0 }
 0x2a0   :  { %v2171_v54 = vadd.f32 %v2170_v50, %v2122_v40  ;;  %v2219_v0 = vpop.f32.mrf.mxu1 }
 0x2a2   :  { %v2220_v9 = vadd.f32 %v2219_v0, %v2171_v54 }
 0x2a5   :  { %v2092_v49 = vpop.f32.mrf.mxu2 }
 0x2a6   :  { %v4281_v11 = vadd.f32 %v2092_v49, %v2044_v23  ;;  %v2130_v49 = vadd.f32 %v2129_v52, %v4269_v31 }
 0x2a7   :  { %v2173_v43 = vpop.f32.mrf.mxu0 }
 0x2a8   :  { %v2174_v51 = vadd.f32 %v2173_v43, %v2125_v57  ;;  %v2222_v37 = vpop.f32.mrf.mxu1 }
 0x2aa   :  { %2290 = vmatmul.bf16.gmra.mxu2 %v4026_v4  ;;  %v2223_v53 = vadd.f32 %v2222_v37, %v2174_v51 }
 0x2ad   :  { %v2095_v25 = vpop.f32.mrf.mxu2 }
 0x2ae   :  { %v4284_v36 = vadd.f32 %v2095_v25, %v2047_v39 }
 0x2af   :  { %v2175_v20 = vpop.f32.mrf.mxu0 }
 0x2b0   :  { %v2224_v57 = vpop.f32.mrf.mxu1 }
 0x2b5   :  { %v2097_v56 = vpop.f32.mrf.mxu2 }
 0x2b6   :  { %v4286_v33 = vadd.f32 %v2097_v56, %v2049_v34  ;;  %v2131_v34 = vpop.f32.mrf.mxu3 }
 0x2b7   :  { %v2178_v39 = vpop.f32.mrf.mxu0  ;;  %v2132_v22 = vadd.f32 %v2131_v34, %v4271_v47 }
 0x2b8   :  { %v2227_v6 = vpop.f32.mrf.mxu1 }
 0x2ba   :  { %2295 = vmatmul.bf16.gmra.mxu2 %v4661_v32 }
 0x2bd   :  { %v2100_v7 = vpop.f32.mrf.mxu2 }
 0x2be   :  { %v4291_v59 = vadd.f32 %v2100_v7, %v2052_v21  ;;  %v2176_v21 = vadd.f32 %v2175_v20, %v2127_v19  ;;  %v2134_v54 = vpop.f32.mrf.mxu3 }
 0x2bf   :  { %v2180_v27 = vpop.f32.mrf.mxu0 }
 0x2c0   :  { %v2229_v50 = vpop.f32.mrf.mxu1  ;;  %v2225_v62 = vadd.f32 %v2224_v57, %v2176_v21  ;;  %v2181_v32 = vadd.f32 %v2180_v27, %v2132_v22 }
 0x2c5   :  { %v2102_v13 = vpop.f32.mrf.mxu2 }
 0x2c6   :  { %v4293_v4 = vadd.f32 %v2102_v13, %v2054_v3  ;;  %v2135_v13 = vadd.f32 %v2134_v54, %v4274_v28 }
 0x2c7   :  { %v2183_v51 = vpop.f32.mrf.mxu0 }
 0x2cd   :  { %v2261_v40 = vpop.f32.mrf.mxu2 }
 0x2ce   :  { %v4295_v41 = vadd.f32 %v2261_v40, %v2213_v61  ;;  %v2179_v61 = vadd.f32 %v2178_v39, %v2130_v49  ;;  %v2184_v40 = vadd.f32 %v2183_v51, %v2135_v13 }
 0x2cf   :  { %v2185_v7 = vpop.f32.mrf.mxu0 }
 0x2d0   :  { %v2228_v25 = vadd.f32 %v2227_v6, %v2179_v61 }
 0x2d5   :  { %v2263_v12 = vpop.f32.mrf.mxu2 }
 0x2d6   :  { %v4297_v23 = vadd.f32 %v2263_v12, %v2215_v45  ;;  %v2232_v45 = vpop.f32.mrf.mxu1 }
 0x2d7   :  { %v2233_v47 = vadd.f32 %v2232_v45, %v2184_v40 }
 0x2d8   :  { %v2301_v10 = vadd.f32 %v4297_v23, %v4295_v41 }
 0x2dd   :  { %v2266_v63 = vpop.f32.mrf.mxu2 }
 0x2de   :  { %v4301_v8 = vadd.f32 %v2266_v63, %v2218_v24  ;;  %v2136_v24 = vpop.f32.mrf.mxu3 }
 0x2df   :  { %v2137_v63 = vadd.f32 %v2136_v24, %v4276_v48 }
 0x2e0   :  { %v2302_v42 = vadd.f32 %v2301_v10, %v4301_v8  ;;  %v2188_v10 = vpop.f32.mrf.mxu0 }
 0x2e5   :  { %v2268_v15 = vpop.f32.mrf.mxu2 }
 0x2e6   :  { %v4304_v58 = vadd.f32 %v2268_v15, %v2220_v9  ;;  %v2230_v9 = vadd.f32 %v2229_v50, %v2181_v32  ;;  %v2139_v60 = vpop.f32.mrf.mxu3 }
 0x2e7   :  { %v2140_v34 = vadd.f32 %v2139_v60, %v4279_v55 }
 0x2e8   :  { %v2303_v14 = vadd.f32 %v2302_v42, %v4304_v58  ;;  %v2186_v42 = vadd.f32 %v2185_v7, %v2137_v63 }
 0x2ed   :  { %v2271_v18 = vpop.f32.mrf.mxu2 }
 0x2ee   :  { %v4308_v1 = vadd.f32 %v2271_v18, %v2223_v53  ;;  %v2234_v53 = vpop.f32.mrf.mxu1  ;;  %v2141_v15 = vpop.f32.mrf.mxu3  ;;  %v2189_v18 = vadd.f32 %v2188_v10, %v2140_v34 }
 0x2ef   :  { %v2235_v28 = vadd.f32 %v2234_v53, %v2186_v42 }
 0x2f0   :  { %v2304_v5 = vadd.f32 %v2303_v14, %v4308_v1  ;;  %v2190_v14 = vpop.f32.mrf.mxu0 }
 0x2f5   :  { %v2273_v3 = vpop.f32.mrf.mxu2 }
 0x2f6   :  { %v4312_v43 = vadd.f32 %v2273_v3, %v2225_v62  ;;  %v2237_v39 = vpop.f32.mrf.mxu1  ;;  %v2144_v48 = vpop.f32.mrf.mxu3  ;;  %v2142_v62 = vadd.f32 %v2141_v15, %v4281_v11 }
 0x2f7   :  { %v2145_v55 = vadd.f32 %v2144_v48, %v4284_v36 }
 0x2f8   :  { %v2305_v29 = vadd.f32 %v2304_v5, %v4312_v43  ;;  %v2238_v5 = vadd.f32 %v2237_v39, %v2189_v18  ;;  %v2193_v3 = vpop.f32.mrf.mxu0  ;;  %v2191_v49 = vadd.f32 %v2190_v14, %v2142_v62 }
 0x2f9   :  { %v2194_v22 = vadd.f32 %v2193_v3, %v2145_v55 }
 0x2fd   :  { %v2276_v44 = vpop.f32.mrf.mxu2 }
 0x2fe   :  { %v4316_v56 = vadd.f32 %v2276_v44, %v2228_v25  ;;  %v2239_v21 = vpop.f32.mrf.mxu1  ;;  %v2146_v44 = vpop.f32.mrf.mxu3 }
 0x2ff   :  { %v2240_v61 = vadd.f32 %v2239_v21, %v2191_v49 }
 0x300   :  { %v2306_v0 = vadd.f32 %v2305_v29, %v4316_v56  ;;  %v2195_v32 = vpop.f32.mrf.mxu0 }
 0x305   :  { %v2278_v31 = vpop.f32.mrf.mxu2 }
 0x306   :  { %v4320_v37 = vadd.f32 %v2278_v31, %v2230_v9  ;;  %v2242_v29 = vpop.f32.mrf.mxu1  ;;  %v2147_v9 = vadd.f32 %v2146_v44, %v4286_v33  ;;  %v2149_v40 = vpop.f32.mrf.mxu3 }
 0x308   :  { %v2307_v12 = vadd.f32 %v2306_v0, %v4320_v37  ;;  %v2243_v0 = vadd.f32 %v2242_v29, %v2194_v22  ;;  %v2196_v13 = vadd.f32 %v2195_v32, %v2147_v9 }
 0x30d   :  { %v2281_v20 = vpop.f32.mrf.mxu2 }
 0x30e   :  { %v4324_v57 = vadd.f32 %v2281_v20, %v2233_v47  ;;  %v2244_v11 = vpop.f32.mrf.mxu1  ;;  %v2150_v47 = vadd.f32 %v2149_v40, %v4291_v59 }
 0x30f   :  { %v2245_v60 = vadd.f32 %v2244_v11, %v2196_v13 }
 0x310   :  { %v2308_v52 = vadd.f32 %v2307_v12, %v4324_v57  ;;  %v2198_v12 = vpop.f32.mrf.mxu0 }
 0x311   :  { %v2199_v20 = vadd.f32 %v2198_v12, %v2150_v47 }
 0x315   :  { %v2283_v6 = vpop.f32.mrf.mxu2 }
 0x316   :  { %v4328_v27 = vadd.f32 %v2283_v6, %v2235_v28  ;;  %v2247_v42 = vpop.f32.mrf.mxu1 }
 0x317   :  { %v2248_v39 = vadd.f32 %v2247_v42, %v2199_v20 }
 0x318   :  { %v2309_v19 = vadd.f32 %v2308_v52, %v4328_v27  ;;  %v2151_v52 = vpop.f32.mrf.mxu3  ;;  %v2200_v15 = vpop.f32.mrf.mxu0 }
 0x319   :  { %v2152_v33 = vadd.f32 %v2151_v52, %v4293_v4 }
 0x31b   :  { %v2201_v6 = vadd.f32 %v2200_v15, %v2152_v33 }
 0x31d   :  { %v2286_v50 = vpop.f32.mrf.mxu2 }
 0x31e   :  { %v2287_v54 = vadd.f32 %v2286_v50, %v2238_v5  ;;  %v2249_v18 = vpop.f32.mrf.mxu1 }
 0x320   :  { %v2310_v51 = vadd.f32 %v2309_v19, %v2287_v54  ;;  %v2250_v19 = vadd.f32 %v2249_v18, %v2201_v6 }
 0x325   :  { %v2288_v25 = vpop.f32.mrf.mxu2 }
 0x326   :  { %v2289_v45 = vadd.f32 %v2288_v25, %v2240_v61 }
 0x328   :  { %v2311_v24 = vadd.f32 %v2310_v51, %v2289_v45 }
 0x32d   :  { %v2291_v7 = vpop.f32.mrf.mxu2 }
 0x32e   :  { %v2292_v31 = vadd.f32 %v2291_v7, %v2243_v0 }
 0x330   :  { %v2312_v53 = vadd.f32 %v2311_v24, %v2292_v31 }
 0x335   :  { %v2293_v10 = vpop.f32.mrf.mxu2 }
 0x336   :  { %v2294_v36 = vadd.f32 %v2293_v10, %v2245_v60 }
 0x338   :  { %v2313_v63 = vadd.f32 %v2312_v53, %v2294_v36 }
 0x33d   :  { %v2296_v28 = vpop.f32.mrf.mxu2 }
 0x33e   :  { %v2297_v14 = vadd.f32 %v2296_v28, %v2248_v39 }
 0x340   :  { %v2314_v34 = vadd.f32 %v2313_v63, %v2297_v14 }
 0x345   :  { %v2298_v21 = vpop.f32.mrf.mxu2 }
 0x346   :  { %v2299_v5 = vadd.f32 %v2298_v21, %v2250_v19 }
 0x348   :  { %v2315_v48 = vadd.f32 %v2314_v34, %v2299_v5 }
 0x34a   :  { %v2316_v50 = vrot.slane %v2315_v48, 4 }
 0x34c   :  { %v2317_v59 = vadd.f32 %v2316_v50, %v2315_v48 }
 0x34e   :  { %v2318_v62 = vrot.slane %v2317_v59, 2 }
 0x350   :  { %v2319_v3 = vadd.f32 %v2318_v62, %v2317_v59 }
 0x352   :  { %v2320_v49 = vrot.slane %v2319_v3, 1 }
 0x354   :  { %v2321_v51 = vadd.f32 %v2320_v49, %v2319_v3 }
 0x356   :  { %v2322_v61 = vmul.f32 0.0078125, %v2321_v51 }
 0x358   :  { %v4337_v29 = vsub.f32 %v4295_v41, %v2322_v61  ;;  %v4340_v4 = vsub.f32 %v4297_v23, %v2322_v61  ;;  %v4343_v25 = vsub.f32 %v4301_v8, %v2322_v61  ;;  %v4346_v55 = vsub.f32 %v4304_v58, %v2322_v61 }
 0x359   :  { %v4349_v44 = vsub.f32 %v4308_v1, %v2322_v61  ;;  %v4352_v22 = vsub.f32 %v4312_v43, %v2322_v61  ;;  %v4355_v24 = vsub.f32 %v4316_v56, %v2322_v61  ;;  %v4358_v41 = vsub.f32 %v4320_v37, %v2322_v61 }
 0x35a   :  { %v4361_v23 = vsub.f32 %v4324_v57, %v2322_v61  ;;  %v4364_v8 = vsub.f32 %v4328_v27, %v2322_v61  ;;  %v4366_v58 = vsub.f32 %v2287_v54, %v2322_v61  ;;  %v4368_v32 = vsub.f32 %v2289_v45, %v2322_v61 }
 0x35b   :  { %v4370_v1 = vsub.f32 %v2292_v31, %v2322_v61  ;;  %v4372_v43 = vsub.f32 %v2294_v36, %v2322_v61  ;;  %v4374_v0 = vsub.f32 %v2297_v14, %v2322_v61  ;;  %v4376_v56 = vsub.f32 %v2299_v5, %v2322_v61 }
 0x35c   :  { %v2339_v37 = vmul.f32 %v4337_v29, %v4337_v29  ;;  %v2340_v57 = vmul.f32 %v4340_v4, %v4340_v4  ;;  %v2341_v27 = vmul.f32 %v4343_v25, %v4343_v25  ;;  %v2342_v45 = vmul.f32 %v4346_v55, %v4346_v55 }
 0x35d   :  { %v2343_v9 = vmul.f32 %v4349_v44, %v4349_v44  ;;  %v2344_v11 = vmul.f32 %v4352_v22, %v4352_v22  ;;  %v2345_v53 = vmul.f32 %v4355_v24, %v4355_v24  ;;  %v2346_v12 = vmul.f32 %v4358_v41, %v4358_v41 }
 0x35e   :  { %v2355_v54 = vadd.f32 %v2340_v57, %v2339_v37  ;;  %v2347_v10 = vmul.f32 %v4361_v23, %v4361_v23  ;;  %v2348_v36 = vmul.f32 %v4364_v8, %v4364_v8  ;;  %v2349_v63 = vmul.f32 %v4366_v58, %v4366_v58 }
 0x35f   :  { %v2350_v52 = vmul.f32 %v4368_v32, %v4368_v32  ;;  %v2351_v15 = vmul.f32 %v4370_v1, %v4370_v1  ;;  %v2352_v33 = vmul.f32 %v4372_v43, %v4372_v43  ;;  %v2353_v6 = vmul.f32 %v4374_v0, %v4374_v0 }
 0x360   :  { %v2356_v7 = vadd.f32 %v2355_v54, %v2341_v27  ;;  %v2354_v18 = vmul.f32 %v4376_v56, %v4376_v56 }
 0x362   :  { %v2357_v31 = vadd.f32 %v2356_v7, %v2342_v45  ;;  %v309_v45 = vld [vmem:[%s4558_s5] sm:$0x1] }
 0x364   :  { %v2358_v13 = vadd.f32 %v2357_v31, %v2343_v9  ;;  %v4416_v9 = vld [vmem:[%s4554_s2] ss:$0 sm:$0xff] }
 0x366   :  { %v2359_v40 = vadd.f32 %v2358_v13, %v2344_v11  ;;  %v4662_v13 = vld [vmem:[#allocation7_spill] sm:$0xff] }
 0x368   :  { %v2360_v60 = vadd.f32 %v2359_v40, %v2345_v53  ;;  %v295_v53 = vadd.f32 %v4416_v9, %v4662_v13 }
 0x36a   :  { %v2361_v47 = vadd.f32 %v2360_v60, %v2346_v12  ;;  %v4663_v12 = vld [vmem:[#allocation11_spill] sm:$0xff] }
 0x36b   :  { %v296_v60 = vadd.f32 %v4416_v9, %v4663_v12 }
 0x36c   :  { %v2362_v20 = vadd.f32 %v2361_v47, %v2347_v10  ;;  %v4664_v10 = vld [vmem:[#allocation12_spill] sm:$0xff] }
 0x36d   :  { %v297_v47 = vadd.f32 %v4416_v9, %v4664_v10  ;;  %v4667_v10 = vld [vmem:[#allocation15_spill] sm:$0xff] }
 0x36e   :  { %v2363_v42 = vadd.f32 %v2362_v20, %v2348_v36  ;;  %v299_v36 = vadd.f32 %v4416_v9, %v4065_v35  ;;  %v301_v20 = vadd.f32 %v4416_v9, %v4125_v38 }
 0x370   :  { %v2364_v39 = vadd.f32 %v2363_v42, %v2349_v63  ;;  %v291_v63 = vadd.f32 %v4416_v9, %v4120_v17 }
 0x372   :  { %v2365_v28 = vadd.f32 %v2364_v39, %v2350_v52 }
 0x374   :  { %v2366_v14 = vadd.f32 %v2365_v28, %v2351_v15  ;;  %v4436_v15 = vld [vmem:[%s4557_s6] ss:$0 sm:$0xff] }
 0x376   :  { %v2367_v34 = vadd.f32 %v2366_v14, %v2352_v33 }
 0x378   :  { %v2368_v19 = vadd.f32 %v2367_v34, %v2353_v6 }
 0x37a   :  { %v2369_v21 = vadd.f32 %v2368_v19, %v2354_v18  ;;  %v294_v18 = vadd.f32 %v4416_v9, %v4178_v30 }
 0x37c   :  { %v2370_v5 = vrot.slane %v2369_v21, 4 }
 0x37e   :  { %v2371_v48 = vadd.f32 %v2370_v5, %v2369_v21  ;;  %v305_v5 = vadd.f32 %v4416_v9, %v4195_v16 }
 0x380   :  { %v2372_v50 = vrot.slane %v2371_v48, 2 }
 0x382   :  { %v2373_v59 = vadd.f32 %v2372_v50, %v2371_v48 }
 0x384   :  { %v2374_v62 = vrot.slane %v2373_v59, 1 }
 0x386   :  { %v2375_v3 = vadd.f32 %v2374_v62, %v2373_v59 }
 0x388   :  { %v2376_v49 = vmul.f32 0.0078125, %v2375_v3 }
 0x38a   :  { %v2377_v51 = vadd.f32 1e-05, %v2376_v49  ;;  %v4665_v49 = vld [vmem:[#allocation13_spill] sm:$0xff] }
 0x38b   :  { %v298_v30 = vadd.f32 %v4416_v9, %v4665_v49 }
 0x38c   :  { %3011 = vrsqrt.f32 %v2377_v51  ;;  %vm2384_vm10 = vweird.f32 %v2377_v51 }
 0x392   :  { %v3012_v61 = vpop.eup %3011 }
 0x393   :  { %v2379_v37 = vmul.f32 %v3012_v61, %v2377_v51  ;;  %vm2385_vm9 = vweird.f32 %v3012_v61 }
 0x394   :  { %vm2386_vm11 = vmor %vm2384_vm10, %vm2385_vm9 }
 0x395   :  { %v2380_v57 = vmul.f32 %v3012_v61, %v2379_v37 }
 0x397   :  { %v2381_v27 = vmul.f32 0.5, %v2380_v57 }
 0x399   :  { %v2382_v54 = vsub.f32 1.5, %v2381_v27 }
 0x39b   :  { %v2383_v7 = vmul.f32 %v3012_v61, %v2382_v54 }
 0x39d   :  { %v2387_v31 = vsel %vm2386_vm11, %v3012_v61, %v2383_v7 }
 0x39e   :  { %v2388_v11 = vmul.f32 %v2387_v31, %v309_v45  ;;  %v4666_v31 = vld [vmem:[#allocation14_spill] sm:$0xff] }
 0x3a0   :  { %v2390_v40 = vperm.slane %v2388_v11, 0  ;;  %v300_v11 = vadd.f32 %v4416_v9, %v4666_v31 }
 0x3a2   :  { %v2392_v42 = vmul.f32 %v2390_v40, %v4337_v29  ;;  %v2393_v52 = vmul.f32 %v2390_v40, %v4340_v4  ;;  %v2394_v39 = vmul.f32 %v2390_v40, %v4343_v25  ;;  %v2395_v28 = vmul.f32 %v2390_v40, %v4346_v55 }
 0x3a3   :  { %v2396_v35 = vmul.f32 %v2390_v40, %v4349_v44  ;;  %v2397_v38 = vmul.f32 %v2390_v40, %v4352_v22  ;;  %v2398_v33 = vmul.f32 %v2390_v40, %v4355_v24  ;;  %v2400_v17 = vmul.f32 %v2390_v40, %v4361_v23 }
 0x3a4   :  { %v2401_v29 = vmul.f32 %v2390_v40, %v4364_v8  ;;  %v2402_v4 = vmul.f32 %v2390_v40, %v4366_v58  ;;  %v2403_v25 = vmul.f32 %v2390_v40, %v4368_v32  ;;  %v2404_v14 = vmul.f32 %v2390_v40, %v4370_v1 }
 0x3a5   :  { %v2405_v6 = vmul.f32 %v2390_v40, %v4372_v43  ;;  %v2406_v55 = vmul.f32 %v2390_v40, %v4374_v0  ;;  %v2407_v44 = vmul.f32 %v2390_v40, %v4376_v56  ;;  %v303_v22 = vadd.f32 %v4416_v9, %v4163_v46 }
 0x3a6   :  { %v2411_v24 = vadd.f32 %v4436_v15, %v2392_v42  ;;  %v2412_v23 = vadd.f32 %v4436_v15, %v2393_v52  ;;  %v2413_v8 = vadd.f32 %v4436_v15, %v2394_v39  ;;  %v2399_v58 = vmul.f32 %v2390_v40, %v4358_v41  ;;  %v4668_v42 = vld [vmem:[#allocation16_spill] sm:$0xff] }
 0x3a7   :  { %v2414_v32 = vadd.f32 %v4436_v15, %v2395_v28  ;;  %v2415_v1 = vadd.f32 %v4436_v15, %v2396_v35  ;;  %v2417_v43 = vadd.f32 %v4436_v15, %v2398_v33  ;;  %v292_v0 = vadd.f32 %v4416_v9, %v4131_v2  ;;  %v4669_v33 = vld [vmem:[#allocation17_spill] sm:$0xff] }
 0x3a8   :  { %v293_v46 = vadd.f32 %v4416_v9, %v4156_v26  ;;  %v2419_v56 = vadd.f32 %v4436_v15, %v2400_v17  ;;  %v2421_v34 = vadd.f32 %v4436_v15, %v2402_v4  ;;  %v2416_v41 = vadd.f32 %v4436_v15, %v2397_v38 }
 0x3a9   :  { %v2423_v19 = vadd.f32 %v4436_v15, %v2404_v14  ;;  %v2425_v21 = vadd.f32 %v4436_v15, %v2406_v55  ;;  %v2427_v2 = vadd.f32 %v2411_v24, %v291_v63  ;;  %v2428_v48 = vadd.f32 %v2412_v23, %v292_v0 }
 0x3aa   :  { %v2429_v50 = vadd.f32 %v2413_v8, %v293_v46  ;;  %v2418_v26 = vadd.f32 %v4436_v15, %v2399_v58  ;;  %v2430_v59 = vadd.f32 %v2414_v32, %v294_v18  ;;  %v2431_v62 = vadd.f32 %v2415_v1, %v295_v53 }
 0x3ab   :  { %v2433_v3 = vadd.f32 %v2417_v43, %v297_v47  ;;  %v2435_v51 = vadd.f32 %v2419_v56, %v299_v36  ;;  %v2437_v61 = vadd.f32 %v2421_v34, %v301_v20  ;;  %v2420_v37 = vadd.f32 %v4436_v15, %v2401_v29 }
 0x3ac   :  { %v2432_v57 = vadd.f32 %v2416_v41, %v296_v60  ;;  %v2439_v27 = vadd.f32 %v2423_v19, %v303_v22  ;;  %v2441_v54 = vadd.f32 %v2425_v21, %v305_v5  ;;  %v2443_v16 = vmax.f32 %v2427_v2, 0.0 }
 0x3ad   :  { %v2444_v45 = vmax.f32 %v2428_v48, 0.0  ;;  %v2445_v7 = vmax.f32 %v2429_v50, 0.0  ;;  %v2422_v13 = vadd.f32 %v4436_v15, %v2403_v25  ;;  %v2434_v53 = vadd.f32 %v2418_v26, %v298_v30 }
 0x3ae   :  { %v2446_v40 = vmax.f32 %v2430_v59, 0.0  ;;  %v2447_v12 = vmax.f32 %v2431_v62, 0.0  ;;  %2460 = vst.msk [vmem:[%s4559_s8] sm:$0xff] %vm2459_vm12, %v2443_v16  ;;  %v302_v60 = vadd.f32 %v4416_v9, %v4667_v10  ;;  %v2424_v47 = vadd.f32 %v4436_v15, %v2405_v6 }
 0x3af   :  { %v2436_v36 = vadd.f32 %v2420_v37, %v300_v11  ;;  %v2448_v20 = vmax.f32 %v2432_v57, 0.0  ;;  %2461 = vst.msk [vmem:[%s4559_s8 + $0x8] sm:$0xff] %vm2459_vm12, %v2444_v45  ;;  %v2449_v63 = vmax.f32 %v2433_v3, 0.0  ;;  %v304_v52 = vadd.f32 %v4416_v9, %v4668_v42 }
 0x3b0   :  { %2462 = vst.msk [vmem:[%s4559_s8 + $0x10] sm:$0xff] %vm2459_vm12, %v2445_v7  ;;  %v2426_v39 = vadd.f32 %v4436_v15, %v2407_v44  ;;  %v2438_v28 = vadd.f32 %v2422_v13, %v302_v60  ;;  %v2450_v35 = vmax.f32 %v2434_v53, 0.0  ;;  %v2451_v38 = vmax.f32 %v2435_v51, 0.0 }
 0x3b1   :  { %2463 = vst.msk [vmem:[%s4559_s8 + $0x18] sm:$0xff] %vm2459_vm12, %v2446_v40  ;;  %v306_v17 = vadd.f32 %v4416_v9, %v4669_v33  ;;  %v2440_v29 = vadd.f32 %v2424_v47, %v304_v52  ;;  %v2452_v4 = vmax.f32 %v2436_v36, 0.0  ;;  %v2453_v15 = vmax.f32 %v2437_v61, 0.0 }
 0x3b2   :  { %2464 = vst.msk [vmem:[%s4559_s8 + $0x20] sm:$0xff] %vm2459_vm12, %v2447_v12  ;;  %v2454_v14 = vmax.f32 %v2438_v28, 0.0  ;;  %v2455_v9 = vmax.f32 %v2439_v27, 0.0  ;;  %v2457_v55 = vmax.f32 %v2441_v54, 0.0 }
 0x3b3   :  { %2465 = vst.msk [vmem:[%s4559_s8 + $0x28] sm:$0xff] %vm2459_vm12, %v2448_v20  ;;  %v2442_v25 = vadd.f32 %v2426_v39, %v306_v17  ;;  %v2456_v6 = vmax.f32 %v2440_v29, 0.0 }
 0x3b4   :  { %2466 = vst.msk [vmem:[%s4559_s8 + $0x30] sm:$0xff] %vm2459_vm12, %v2449_v63 }
 0x3b5   :  { %2467 = vst.msk [vmem:[%s4559_s8 + $0x38] sm:$0xff] %vm2459_vm12, %v2450_v35  ;;  %v2458_v44 = vmax.f32 %v2442_v25, 0.0 }
 0x3b6   :  { %2468 = vst.msk [vmem:[%s4559_s8 + $0x40] sm:$0xff] %vm2459_vm12, %v2451_v38 }
 0x3b7   :  { %2469 = vst.msk [vmem:[%s4559_s8 + $0x48] sm:$0xff] %vm2459_vm12, %v2452_v4 }
 0x3b8   :  { %2470 = vst.msk [vmem:[%s4559_s8 + $0x50] sm:$0xff] %vm2459_vm12, %v2453_v15 }
 0x3b9   :  { %2471 = vst.msk [vmem:[%s4559_s8 + $0x58] sm:$0xff] %vm2459_vm12, %v2454_v14 }
 0x3ba   :  { %2472 = vst.msk [vmem:[%s4559_s8 + $0x60] sm:$0xff] %vm2459_vm12, %v2455_v9 }
 0x3bb   :  { %2473 = vst.msk [vmem:[%s4559_s8 + $0x68] sm:$0xff] %vm2459_vm12, %v2456_v6 }
 0x3bc   :  { %2474 = vst.msk [vmem:[%s4559_s8 + $0x70] sm:$0xff] %vm2459_vm12, %v2457_v55 }
 0x3bd   :  { %2475 = vst.msk [vmem:[%s4559_s8 + $0x78] sm:$0xff] %vm2459_vm12, %v2458_v44 }

</bundles_post_ra>
